<compile_context>
chip_gen: v6e
topology: v6e:2x2x1
jax: 0.10.0
libtpu: 0.0.40
codegen_flags: <defaults>
</compile_context>

<pallas_src>
import functools

import jax
import jax.numpy as jnp
from jax import lax
from jax.experimental import pallas as pl
from jax.experimental.pallas import tpu as pltpu


def _ceil_div(a, b):
    return -(-a // b)


# ----------------------------------------------------------------------------
# Fused kernel: LeakyReLU -> Conv(k4,s2,p1) -> ReLU -> ConvT(k4,s2,p1)
# for Nb batch elements per grid step.
#   xs_ref  : (Nb, Ho+1, Wo+1, 4C)   space-to-depth of the pad-1 input (f32)
#   wd_ref  : (4, 4C, C2)            down-conv taps (dh*2+dw), bf16
#   wu_ref  : (9, C2, 4*Cout)        up-conv, offset (oy*3+ox) major, the 4
#                                    sub-pixel phases packed on lanes, bf16
#   bd_ref  : (1, C2)    bu_ref : (1, 4*Cout)        f32
#   out_ref : (Nb, Ho, Wo, 4*Cout)   phase-packed ConvT output (f32)
#   rpad_ref: VMEM scratch (Nb, Ho+2, Wo+2, C2) f32 — zero-padded down act.
# ----------------------------------------------------------------------------
def _fused_unet_kernel(xs_ref, wd_ref, wu_ref, bd_ref, bu_ref, out_ref,
                       rpad_ref, *, Nb, Ho, Wo, alpha):
    Kd = xs_ref.shape[-1]          # 4*C
    C2 = wd_ref.shape[-1]          # 2*C
    P4C = wu_ref.shape[-1]         # 4*Cout
    M = Nb * Ho * Wo
    f32 = jnp.float32

    # Zero only the 1-pixel halo border of the persistent scratch; the
    # interior is fully overwritten below.  Done every step (cheap) so the
    # kernel is correct under megacore grid sharding.
    rpad_ref[:, 0:1, :, :] = jnp.zeros((Nb, 1, Wo + 2, C2), f32)
    rpad_ref[:, Ho + 1:Ho + 2, :, :] = jnp.zeros((Nb, 1, Wo + 2, C2), f32)
    rpad_ref[:, :, 0:1, :] = jnp.zeros((Nb, Ho + 2, 1, C2), f32)
    rpad_ref[:, :, Wo + 1:Wo + 2, :] = jnp.zeros((Nb, Ho + 2, 1, C2), f32)

    # LeakyReLU once on the un-expanded tile (f32 VPU), cast to bf16 for MXU.
    xs = xs_ref[...]
    xs = jnp.where(xs >= 0, xs, alpha * xs).astype(jnp.bfloat16)

    # ---- down: Conv2d(C, 2C, k=4, s=2, p=1) == 4 shifted-tap stride-1
    # matmuls on the space-to-depth input; M = Nb*Ho*Wo rows per matmul.
    acc = jnp.zeros((M, C2), f32)
    for dh in range(2):
        for dw in range(2):
            sl = xs[:, dh:dh + Ho, dw:dw + Wo, :].reshape(M, Kd)
            acc = acc + jnp.dot(sl, wd_ref[dh * 2 + dw],
                                preferred_element_type=f32)
    r = jnp.maximum(acc + bd_ref[...], 0.0)                  # bias + ReLU, f32

    # Write the interior of the zero-padded scratch (transposed-conv halo).
    rpad_ref[:, 1:Ho + 1, 1:Wo + 1, :] = r.reshape(Nb, Ho, Wo, C2)

    # ---- up: ConvTranspose2d(2C, C, k=4, s=2, p=1).  9 distinct spatial
    # offsets (deduplicated from 16 (phase, tap) pairs); the 4 sub-pixel
    # phases are packed along the output lane axis so each offset is a single
    # matmul and there is one lane-packed store.  No structural-zero FLOPs.
    accu = jnp.zeros((M, P4C), f32)
    for oy in range(3):
        for ox in range(3):
            sl = rpad_ref[:, oy:oy + Ho, ox:ox + Wo, :]
            sl = sl.reshape(M, C2).astype(jnp.bfloat16)
            accu = accu + jnp.dot(sl, wu_ref[oy * 3 + ox],
                                  preferred_element_type=f32)
    out = (accu + bu_ref[...]).reshape(Nb, Ho, Wo, P4C)
    out_ref[...] = out.astype(out_ref.dtype)


# ----------------------------------------------------------------------------
# One-time weight repacking (hoisted out of the per-call forward path).
# ----------------------------------------------------------------------------
def pack_minimal_unet_params(params):
    w_down, b_down = params["w_down"], params["b_down"]
    w_up, b_up = params["w_up"], params["b_up"]
    C2, C, _, _ = w_down.shape          # Conv2d weight: (Cout=2C, Cin=C, 4, 4)
    Cout = w_up.shape[1]                # ConvTranspose weight: (Cin=2C, Cout, 4, 4)

    # down: (C2, C, 4, 4) -> (tap=dh*2+dw, s2d-chan=(dy*2+dx)*C+c, C2), bf16
    wd = w_down.astype(jnp.float32).reshape(C2, C, 2, 2, 2, 2)
    wd = jnp.transpose(wd, (2, 4, 3, 5, 1, 0)).reshape(4, 4 * C, C2)
    wd = wd.astype(jnp.bfloat16)

    # up: offset-major, phases packed on lanes.
    # Output pixel (2m+py, 2n+px) <- rpad[m+oy, n+ox] . w_up[:, :, ky, kx]
    # with oy=py+dy, ky=3-2*dy-py (and likewise for x).
    wu = jnp.zeros((9, C2, 4 * Cout), jnp.float32)
    wuf = w_up.astype(jnp.float32)
    for oy in range(3):
        for ox in range(3):
            for py in range(2):
                dy = oy - py
                if dy < 0 or dy > 1:
                    continue
                for px in range(2):
                    dx = ox - px
                    if dx < 0 or dx > 1:
                        continue
                    p = py * 2 + px
                    wu = wu.at[oy * 3 + ox, :,
                               p * Cout:(p + 1) * Cout].set(
                        wuf[:, :, 3 - 2 * dy - py, 3 - 2 * dx - px])
    wu = wu.astype(jnp.bfloat16)

    bd = b_down.astype(jnp.float32).reshape(1, C2)
    bu = jnp.tile(b_up.astype(jnp.float32), 4).reshape(1, 4 * Cout)
    return {"wd": wd, "wu": wu, "bd": bd, "bu": bu}


# ----------------------------------------------------------------------------
# Forward: layout glue + the single fused pallas_call + depth-to-space + skip.
# ----------------------------------------------------------------------------
def minimal_unet_forward(packed, x, mask=None):
    wd, wu, bd, bu = packed["wd"], packed["wu"], packed["bd"], packed["bu"]
    N, C, H, W = x.shape
    Kd, C2 = wd.shape[1], wd.shape[2]
    P4C = wu.shape[2]
    Cout = P4C // 4
    assert Kd == 4 * C and H % 2 == 0 and W % 2 == 0
    Ho, Wo = H // 2, W // 2
    Hs, Ws = Ho + 1, Wo + 1
    f32 = jnp.float32

    # Fold Nb batch elements into the matmul M dimension (target M ~ 256).
    M_TARGET = 256
    Nb = max(1, min(N, _ceil_div(M_TARGET, Ho * Wo)))
    Npad = _ceil_div(N, Nb) * Nb

    # Input glue: NCHW -> pad(1) -> space-to-depth(2), channel-last.
    # No lane padding: last dim stays 4*C (block dim == full array dim).
    xp = jnp.pad(x.astype(f32), ((0, 0), (0, 0), (1, 1), (1, 1)))
    xs2d = xp.reshape(N, C, Hs, 2, Ws, 2)
    xs2d = jnp.transpose(xs2d, (0, 2, 4, 3, 5, 1)).reshape(N, Hs, Ws, 4 * C)
    if Npad != N:
        xs2d = jnp.pad(xs2d, ((0, Npad - N), (0, 0), (0, 0), (0, 0)))

    kernel = functools.partial(_fused_unet_kernel,
                               Nb=Nb, Ho=Ho, Wo=Wo, alpha=0.2)
    up_packed = pl.pallas_call(
        kernel,
        out_shape=jax.ShapeDtypeStruct((Npad, Ho, Wo, P4C), f32),
        grid=(Npad // Nb,),
        in_specs=[
            pl.BlockSpec((Nb, Hs, Ws, 4 * C), lambda n: (n, 0, 0, 0)),
            pl.BlockSpec((4, Kd, C2), lambda n: (0, 0, 0)),
            pl.BlockSpec((9, C2, P4C), lambda n: (0, 0, 0)),
            pl.BlockSpec((1, C2), lambda n: (0, 0)),
            pl.BlockSpec((1, P4C), lambda n: (0, 0)),
        ],
        out_specs=pl.BlockSpec((Nb, Ho, Wo, P4C), lambda n: (n, 0, 0, 0)),
        scratch_shapes=[pltpu.VMEM((Nb, Ho + 2, Wo + 2, C2), f32)],
        compiler_params=pltpu.CompilerParams(
            dimension_semantics=("parallel",),
            vmem_limit_bytes=32 * 1024 * 1024,
        ),
    )(xs2d, wd, wu, bd, bu)

    # Depth-to-space of the lane-packed phases (pure reshape/transpose) + NCHW.
    up = up_packed[:N].reshape(N, Ho, Wo, 2, 2, Cout)
    up = jnp.transpose(up, (0, 1, 3, 2, 4, 5)).reshape(N, H, W, Cout)
    up = jnp.transpose(up, (0, 3, 1, 2)).astype(x.dtype)

    # Skip connection (withoutskip=False), preserving (tensor, mask) output.
    return jnp.concatenate([x, up], axis=1), mask


# ----------------------------------------------------------------------------
# Pure-XLA reference (independent conv path) for verification
# ----------------------------------------------------------------------------
def _reference(params, x):
    lrelu = jnp.where(x >= 0, x, 0.2 * x)
    d = lax.conv_general_dilated(
        lrelu, params["w_down"], (2, 2), ((1, 1), (1, 1)),
        dimension_numbers=("NCHW", "OIHW", "NCHW"),
        precision=lax.Precision.HIGHEST,
    ) + params["b_down"][None, :, None, None]
    r = jnp.maximum(d, 0.0)
    w_conv = jnp.transpose(params["w_up"], (1, 0, 2, 3))[:, :, ::-1, ::-1]
    u = lax.conv_general_dilated(
        r, w_conv, (1, 1), ((2, 2), (2, 2)), lhs_dilation=(2, 2),
        dimension_numbers=("NCHW", "OIHW", "NCHW"),
        precision=lax.Precision.HIGHEST,
    ) + params["b_up"][None, :, None, None]
    return jnp.concatenate([x, u], axis=1)


if __name__ == "__main__":
    C = 4          # input channels
    N, H, W = 2, 16, 16

    key = jax.random.PRNGKey(0)
    k1, k2, k3, k4, kx = jax.random.split(key, 5)
    params = {
        # Conv2d(C, 2C, 4, 2, 1): weight [Cout, Cin, kH, kW]
        "w_down": 0.1 * jax.random.normal(k1, (2 * C, C, 4, 4), jnp.float32),
        "b_down": 0.1 * jax.random.normal(k2, (2 * C,), jnp.float32),
        # ConvTranspose2d(2C, C, 4, 2, 1): weight [Cin, Cout, kH, kW]
        "w_up": 0.1 * jax.random.normal(k3, (2 * C, C, 4, 4), jnp.float32),
        "b_up": 0.1 * jax.random.normal(k4, (C,), jnp.float32),
    }
    x = jax.random.normal(kx, (N, C, H, W), jnp.float32)

    packed = pack_minimal_unet_params(params)     # one-time weight repacking
    fwd = jax.jit(lambda p, xx: minimal_unet_forward(p, xx, None))
    out, mask = fwd(packed, x)
    out = jax.block_until_ready(out)
    assert out.shape == (N, 2 * C, H, W), out.shape
    assert mask is None

    ref = jax.block_until_ready(_reference(params, x))
    max_err = float(jnp.max(jnp.abs(out - ref)))
    # bf16 MXU operands with f32 accumulate: tolerance loosened vs an f32 pass.
    assert jnp.allclose(out, ref, atol=3e-2, rtol=3e-2), max_err

    print("KERNEL_OK")
</pallas_src>

<mosaic_0001>
module attributes {stable_mosaic.version = 11 : i64} {
  func.func @_fused_unet_kernel(%arg0: i32, %arg1: memref<2x9x9x16xf32, #tpu.memory_space<vmem>>, %arg2: memref<4x16x8xbf16, #tpu.memory_space<vmem>>, %arg3: memref<9x8x16xbf16, #tpu.memory_space<vmem>>, %arg4: memref<1x8xf32, #tpu.memory_space<vmem>>, %arg5: memref<1x16xf32, #tpu.memory_space<vmem>>, %arg6: memref<2x8x8x16xf32, #tpu.memory_space<vmem>>, %arg7: memref<2x10x10x8xf32, #tpu.memory_space<vmem>>) attributes {dimension_semantics = [#tpu.dimension_semantics<parallel>], iteration_bounds = array<i64: 1>, scalar_prefetch = 0 : i64, scratch_operands = 1 : i64, tpu.core_type = #tpu.core_type<tc>, window_params = [{transform_indices = @transform_0, window_bounds = array<i64: 2, 9, 9, 16>}, {pipeline_mode = #tpu.pipeline_mode<synchronous>, transform_indices = @transform_1, window_bounds = array<i64: 4, 16, 8>}, {pipeline_mode = #tpu.pipeline_mode<synchronous>, transform_indices = @transform_2, window_bounds = array<i64: 9, 8, 16>}, {pipeline_mode = #tpu.pipeline_mode<synchronous>, transform_indices = @transform_3, window_bounds = array<i64: 1, 8>}, {pipeline_mode = #tpu.pipeline_mode<synchronous>, transform_indices = @transform_4, window_bounds = array<i64: 1, 16>}, {transform_indices = @transform_5, window_bounds = array<i64: 2, 8, 8, 16>}]} {
    %cst = arith.constant 0.000000e+00 : f32
    %0 = vector.broadcast %cst : f32 to vector<2x1x10x8xf32>
    %c0 = arith.constant 0 : index
    %c0_0 = arith.constant 0 : index
    %c0_1 = arith.constant 0 : index
    %c0_2 = arith.constant 0 : index
    %1 = vector.load %arg7[%c0, %c0_0, %c0_1, %c0_2] : memref<2x10x10x8xf32, #tpu.memory_space<vmem>>, vector<2x1x10x8xf32>
    tpu.vector_store %arg7[%c0, %c0_0, %c0_1, %c0_2], %0 {strides = array<i32>} : memref<2x10x10x8xf32, #tpu.memory_space<vmem>>, vector<2x1x10x8xf32>,
    %cst_3 = arith.constant 0.000000e+00 : f32
    %2 = vector.broadcast %cst_3 : f32 to vector<2x1x10x8xf32>
    %c0_4 = arith.constant 0 : index
    %c9 = arith.constant 9 : index
    %c0_5 = arith.constant 0 : index
    %c0_6 = arith.constant 0 : index
    %3 = vector.load %arg7[%c0_4, %c9, %c0_5, %c0_6] : memref<2x10x10x8xf32, #tpu.memory_space<vmem>>, vector<2x1x10x8xf32>
    tpu.vector_store %arg7[%c0_4, %c9, %c0_5, %c0_6], %2 {strides = array<i32>} : memref<2x10x10x8xf32, #tpu.memory_space<vmem>>, vector<2x1x10x8xf32>,
    %cst_7 = arith.constant 0.000000e+00 : f32
    %4 = vector.broadcast %cst_7 : f32 to vector<2x10x1x8xf32>
    %c0_8 = arith.constant 0 : index
    %c0_9 = arith.constant 0 : index
    %c0_10 = arith.constant 0 : index
    %c0_11 = arith.constant 0 : index
    %5 = vector.load %arg7[%c0_8, %c0_9, %c0_10, %c0_11] : memref<2x10x10x8xf32, #tpu.memory_space<vmem>>, vector<2x10x1x8xf32>
    tpu.vector_store %arg7[%c0_8, %c0_9, %c0_10, %c0_11], %4 {strides = array<i32>} : memref<2x10x10x8xf32, #tpu.memory_space<vmem>>, vector<2x10x1x8xf32>,
    %cst_12 = arith.constant 0.000000e+00 : f32
    %6 = vector.broadcast %cst_12 : f32 to vector<2x10x1x8xf32>
    %c0_13 = arith.constant 0 : index
    %c0_14 = arith.constant 0 : index
    %c9_15 = arith.constant 9 : index
    %c0_16 = arith.constant 0 : index
    %7 = vector.load %arg7[%c0_13, %c0_14, %c9_15, %c0_16] : memref<2x10x10x8xf32, #tpu.memory_space<vmem>>, vector<2x10x1x8xf32>
    tpu.vector_store %arg7[%c0_13, %c0_14, %c9_15, %c0_16], %6 {strides = array<i32>} : memref<2x10x10x8xf32, #tpu.memory_space<vmem>>, vector<2x10x1x8xf32>,
    %c0_17 = arith.constant 0 : index
    %c0_18 = arith.constant 0 : index
    %c0_19 = arith.constant 0 : index
    %c0_20 = arith.constant 0 : index
    %8 = vector.load %arg1[%c0_17, %c0_18, %c0_19, %c0_20] : memref<2x9x9x16xf32, #tpu.memory_space<vmem>>, vector<2x9x9x16xf32>
    %cst_21 = arith.constant 0.000000e+00 : f32
    %9 = vector.broadcast %cst_21 : f32 to vector<2x9x9x16xf32>
    %10 = arith.cmpf oge, %8, %9 : vector<2x9x9x16xf32>
    %cst_22 = arith.constant 2.000000e-01 : f32
    %11 = vector.broadcast %cst_22 : f32 to vector<2x9x9x16xf32>
    %12 = arith.mulf %11, %8 : vector<2x9x9x16xf32>
    %13 = arith.select %10, %8, %12 : vector<2x9x9x16xi1>, vector<2x9x9x16xf32>
    %14 = arith.truncf %13 : vector<2x9x9x16xf32> to vector<2x9x9x16xbf16>
    %cst_23 = arith.constant 0.000000e+00 : f32
    %15 = vector.broadcast %cst_23 : f32 to vector<128x8xf32>
    %16 = vector.extract_strided_slice %14 {offsets = [0, 0, 0, 0], sizes = [2, 8, 8, 16], strides = [1, 1, 1, 1]} : vector<2x9x9x16xbf16> to vector<2x8x8x16xbf16>
    %17 = vector.shape_cast %16 : vector<2x8x8x16xbf16> to vector<128x16xbf16>
    %c0_24 = arith.constant 0 : index
    %c0_25 = arith.constant 0 : index
    %c0_26 = arith.constant 0 : index
    %18 = vector.load %arg2[%c0_24, %c0_25, %c0_26] : memref<4x16x8xbf16, #tpu.memory_space<vmem>>, vector<1x16x8xbf16>
    %19 = vector.shape_cast %18 : vector<1x16x8xbf16> to vector<16x8xbf16>
    %cst_27 = arith.constant dense<0.000000e+00> : vector<128x8xf32>
    %20 = tpu.matmul %17, %19, %cst_27 {dimension_numbers = #tpu.dot_dimension_numbers<[1], [0], [0], [1], [0, 0, 1, 1], [], []>} : vector<128x16xbf16>, vector<16x8xbf16>, vector<128x8xf32> -> vector<128x8xf32>
    %21 = arith.addf %15, %20 : vector<128x8xf32>
    %22 = vector.extract_strided_slice %14 {offsets = [0, 0, 1, 0], sizes = [2, 8, 8, 16], strides = [1, 1, 1, 1]} : vector<2x9x9x16xbf16> to vector<2x8x8x16xbf16>
    %23 = vector.shape_cast %22 : vector<2x8x8x16xbf16> to vector<128x16xbf16>
    %c1 = arith.constant 1 : index
    %c0_28 = arith.constant 0 : index
    %c0_29 = arith.constant 0 : index
    %24 = vector.load %arg2[%c1, %c0_28, %c0_29] : memref<4x16x8xbf16, #tpu.memory_space<vmem>>, vector<1x16x8xbf16>
    %25 = vector.shape_cast %24 : vector<1x16x8xbf16> to vector<16x8xbf16>
    %cst_30 = arith.constant dense<0.000000e+00> : vector<128x8xf32>
    %26 = tpu.matmul %23, %25, %cst_30 {dimension_numbers = #tpu.dot_dimension_numbers<[1], [0], [0], [1], [0, 0, 1, 1], [], []>} : vector<128x16xbf16>, vector<16x8xbf16>, vector<128x8xf32> -> vector<128x8xf32>
    %27 = arith.addf %21, %26 : vector<128x8xf32>
    %28 = vector.extract_strided_slice %14 {offsets = [0, 1, 0, 0], sizes = [2, 8, 8, 16], strides = [1, 1, 1, 1]} : vector<2x9x9x16xbf16> to vector<2x8x8x16xbf16>
    %29 = vector.shape_cast %28 : vector<2x8x8x16xbf16> to vector<128x16xbf16>
    %c2 = arith.constant 2 : index
    %c0_31 = arith.constant 0 : index
    %c0_32 = arith.constant 0 : index
    %30 = vector.load %arg2[%c2, %c0_31, %c0_32] : memref<4x16x8xbf16, #tpu.memory_space<vmem>>, vector<1x16x8xbf16>
    %31 = vector.shape_cast %30 : vector<1x16x8xbf16> to vector<16x8xbf16>
    %cst_33 = arith.constant dense<0.000000e+00> : vector<128x8xf32>
    %32 = tpu.matmul %29, %31, %cst_33 {dimension_numbers = #tpu.dot_dimension_numbers<[1], [0], [0], [1], [0, 0, 1, 1], [], []>} : vector<128x16xbf16>, vector<16x8xbf16>, vector<128x8xf32> -> vector<128x8xf32>
    %33 = arith.addf %27, %32 : vector<128x8xf32>
    %34 = vector.extract_strided_slice %14 {offsets = [0, 1, 1, 0], sizes = [2, 8, 8, 16], strides = [1, 1, 1, 1]} : vector<2x9x9x16xbf16> to vector<2x8x8x16xbf16>
    %35 = vector.shape_cast %34 : vector<2x8x8x16xbf16> to vector<128x16xbf16>
    %c3 = arith.constant 3 : index
    %c0_34 = arith.constant 0 : index
    %c0_35 = arith.constant 0 : index
    %36 = vector.load %arg2[%c3, %c0_34, %c0_35] : memref<4x16x8xbf16, #tpu.memory_space<vmem>>, vector<1x16x8xbf16>
    %37 = vector.shape_cast %36 : vector<1x16x8xbf16> to vector<16x8xbf16>
    %cst_36 = arith.constant dense<0.000000e+00> : vector<128x8xf32>
    %38 = tpu.matmul %35, %37, %cst_36 {dimension_numbers = #tpu.dot_dimension_numbers<[1], [0], [0], [1], [0, 0, 1, 1], [], []>} : vector<128x16xbf16>, vector<16x8xbf16>, vector<128x8xf32> -> vector<128x8xf32>
    %39 = arith.addf %33, %38 : vector<128x8xf32>
    %c0_37 = arith.constant 0 : index
    %c0_38 = arith.constant 0 : index
    %40 = vector.load %arg4[%c0_37, %c0_38] : memref<1x8xf32, #tpu.memory_space<vmem>>, vector<1x8xf32>
    %41 = vector.broadcast %40 : vector<1x8xf32> to vector<128x8xf32>
    %42 = arith.addf %39, %41 : vector<128x8xf32>
    %cst_39 = arith.constant 0.000000e+00 : f32
    %43 = vector.broadcast %cst_39 : f32 to vector<128x8xf32>
    %44 = arith.maximumf %42, %43 : vector<128x8xf32>
    %45 = vector.shape_cast %44 : vector<128x8xf32> to vector<2x8x8x8xf32>
    %c0_40 = arith.constant 0 : index
    %c1_41 = arith.constant 1 : index
    %c1_42 = arith.constant 1 : index
    %c0_43 = arith.constant 0 : index
    %46 = vector.load %arg7[%c0_40, %c1_41, %c1_42, %c0_43] : memref<2x10x10x8xf32, #tpu.memory_space<vmem>>, vector<2x8x8x8xf32>
    tpu.vector_store %arg7[%c0_40, %c1_41, %c1_42, %c0_43], %45 {strides = array<i32>} : memref<2x10x10x8xf32, #tpu.memory_space<vmem>>, vector<2x8x8x8xf32>,
    %cst_44 = arith.constant 0.000000e+00 : f32
    %47 = vector.broadcast %cst_44 : f32 to vector<128x16xf32>
    %c0_45 = arith.constant 0 : index
    %c0_46 = arith.constant 0 : index
    %c0_47 = arith.constant 0 : index
    %c0_48 = arith.constant 0 : index
    %48 = vector.load %arg7[%c0_45, %c0_46, %c0_47, %c0_48] : memref<2x10x10x8xf32, #tpu.memory_space<vmem>>, vector<2x8x8x8xf32>
    %49 = vector.shape_cast %48 : vector<2x8x8x8xf32> to vector<128x8xf32>
    %50 = arith.truncf %49 : vector<128x8xf32> to vector<128x8xbf16>
    %c0_49 = arith.constant 0 : index
    %c0_50 = arith.constant 0 : index
    %c0_51 = arith.constant 0 : index
    %51 = vector.load %arg3[%c0_49, %c0_50, %c0_51] : memref<9x8x16xbf16, #tpu.memory_space<vmem>>, vector<1x8x16xbf16>
    %52 = vector.shape_cast %51 : vector<1x8x16xbf16> to vector<8x16xbf16>
    %cst_52 = arith.constant dense<0.000000e+00> : vector<128x16xf32>
    %53 = tpu.matmul %50, %52, %cst_52 {dimension_numbers = #tpu.dot_dimension_numbers<[1], [0], [0], [1], [0, 0, 1, 1], [], []>} : vector<128x8xbf16>, vector<8x16xbf16>, vector<128x16xf32> -> vector<128x16xf32>
    %54 = arith.addf %47, %53 : vector<128x16xf32>
    %c0_53 = arith.constant 0 : index
    %c0_54 = arith.constant 0 : index
    %c1_55 = arith.constant 1 : index
    %c0_56 = arith.constant 0 : index
    %55 = vector.load %arg7[%c0_53, %c0_54, %c1_55, %c0_56] : memref<2x10x10x8xf32, #tpu.memory_space<vmem>>, vector<2x8x8x8xf32>
    %56 = vector.shape_cast %55 : vector<2x8x8x8xf32> to vector<128x8xf32>
    %57 = arith.truncf %56 : vector<128x8xf32> to vector<128x8xbf16>
    %c1_57 = arith.constant 1 : index
    %c0_58 = arith.constant 0 : index
    %c0_59 = arith.constant 0 : index
    %58 = vector.load %arg3[%c1_57, %c0_58, %c0_59] : memref<9x8x16xbf16, #tpu.memory_space<vmem>>, vector<1x8x16xbf16>
    %59 = vector.shape_cast %58 : vector<1x8x16xbf16> to vector<8x16xbf16>
    %cst_60 = arith.constant dense<0.000000e+00> : vector<128x16xf32>
    %60 = tpu.matmul %57, %59, %cst_60 {dimension_numbers = #tpu.dot_dimension_numbers<[1], [0], [0], [1], [0, 0, 1, 1], [], []>} : vector<128x8xbf16>, vector<8x16xbf16>, vector<128x16xf32> -> vector<128x16xf32>
    %61 = arith.addf %54, %60 : vector<128x16xf32>
    %c0_61 = arith.constant 0 : index
    %c0_62 = arith.constant 0 : index
    %c2_63 = arith.constant 2 : index
    %c0_64 = arith.constant 0 : index
    %62 = vector.load %arg7[%c0_61, %c0_62, %c2_63, %c0_64] : memref<2x10x10x8xf32, #tpu.memory_space<vmem>>, vector<2x8x8x8xf32>
    %63 = vector.shape_cast %62 : vector<2x8x8x8xf32> to vector<128x8xf32>
    %64 = arith.truncf %63 : vector<128x8xf32> to vector<128x8xbf16>
    %c2_65 = arith.constant 2 : index
    %c0_66 = arith.constant 0 : index
    %c0_67 = arith.constant 0 : index
    %65 = vector.load %arg3[%c2_65, %c0_66, %c0_67] : memref<9x8x16xbf16, #tpu.memory_space<vmem>>, vector<1x8x16xbf16>
    %66 = vector.shape_cast %65 : vector<1x8x16xbf16> to vector<8x16xbf16>
    %cst_68 = arith.constant dense<0.000000e+00> : vector<128x16xf32>
    %67 = tpu.matmul %64, %66, %cst_68 {dimension_numbers = #tpu.dot_dimension_numbers<[1], [0], [0], [1], [0, 0, 1, 1], [], []>} : vector<128x8xbf16>, vector<8x16xbf16>, vector<128x16xf32> -> vector<128x16xf32>
    %68 = arith.addf %61, %67 : vector<128x16xf32>
    %c0_69 = arith.constant 0 : index
    %c1_70 = arith.constant 1 : index
    %c0_71 = arith.constant 0 : index
    %c0_72 = arith.constant 0 : index
    %69 = vector.load %arg7[%c0_69, %c1_70, %c0_71, %c0_72] : memref<2x10x10x8xf32, #tpu.memory_space<vmem>>, vector<2x8x8x8xf32>
    %70 = vector.shape_cast %69 : vector<2x8x8x8xf32> to vector<128x8xf32>
    %71 = arith.truncf %70 : vector<128x8xf32> to vector<128x8xbf16>
    %c3_73 = arith.constant 3 : index
    %c0_74 = arith.constant 0 : index
    %c0_75 = arith.constant 0 : index
    %72 = vector.load %arg3[%c3_73, %c0_74, %c0_75] : memref<9x8x16xbf16, #tpu.memory_space<vmem>>, vector<1x8x16xbf16>
    %73 = vector.shape_cast %72 : vector<1x8x16xbf16> to vector<8x16xbf16>
    %cst_76 = arith.constant dense<0.000000e+00> : vector<128x16xf32>
    %74 = tpu.matmul %71, %73, %cst_76 {dimension_numbers = #tpu.dot_dimension_numbers<[1], [0], [0], [1], [0, 0, 1, 1], [], []>} : vector<128x8xbf16>, vector<8x16xbf16>, vector<128x16xf32> -> vector<128x16xf32>
    %75 = arith.addf %68, %74 : vector<128x16xf32>
    %c0_77 = arith.constant 0 : index
    %c1_78 = arith.constant 1 : index
    %c1_79 = arith.constant 1 : index
    %c0_80 = arith.constant 0 : index
    %76 = vector.load %arg7[%c0_77, %c1_78, %c1_79, %c0_80] : memref<2x10x10x8xf32, #tpu.memory_space<vmem>>, vector<2x8x8x8xf32>
    %77 = vector.shape_cast %76 : vector<2x8x8x8xf32> to vector<128x8xf32>
    %78 = arith.truncf %77 : vector<128x8xf32> to vector<128x8xbf16>
    %c4 = arith.constant 4 : index
    %c0_81 = arith.constant 0 : index
    %c0_82 = arith.constant 0 : index
    %79 = vector.load %arg3[%c4, %c0_81, %c0_82] : memref<9x8x16xbf16, #tpu.memory_space<vmem>>, vector<1x8x16xbf16>
    %80 = vector.shape_cast %79 : vector<1x8x16xbf16> to vector<8x16xbf16>
    %cst_83 = arith.constant dense<0.000000e+00> : vector<128x16xf32>
    %81 = tpu.matmul %78, %80, %cst_83 {dimension_numbers = #tpu.dot_dimension_numbers<[1], [0], [0], [1], [0, 0, 1, 1], [], []>} : vector<128x8xbf16>, vector<8x16xbf16>, vector<128x16xf32> -> vector<128x16xf32>
    %82 = arith.addf %75, %81 : vector<128x16xf32>
    %c0_84 = arith.constant 0 : index
    %c1_85 = arith.constant 1 : index
    %c2_86 = arith.constant 2 : index
    %c0_87 = arith.constant 0 : index
    %83 = vector.load %arg7[%c0_84, %c1_85, %c2_86, %c0_87] : memref<2x10x10x8xf32, #tpu.memory_space<vmem>>, vector<2x8x8x8xf32>
    %84 = vector.shape_cast %83 : vector<2x8x8x8xf32> to vector<128x8xf32>
    %85 = arith.truncf %84 : vector<128x8xf32> to vector<128x8xbf16>
    %c5 = arith.constant 5 : index
    %c0_88 = arith.constant 0 : index
    %c0_89 = arith.constant 0 : index
    %86 = vector.load %arg3[%c5, %c0_88, %c0_89] : memref<9x8x16xbf16, #tpu.memory_space<vmem>>, vector<1x8x16xbf16>
    %87 = vector.shape_cast %86 : vector<1x8x16xbf16> to vector<8x16xbf16>
    %cst_90 = arith.constant dense<0.000000e+00> : vector<128x16xf32>
    %88 = tpu.matmul %85, %87, %cst_90 {dimension_numbers = #tpu.dot_dimension_numbers<[1], [0], [0], [1], [0, 0, 1, 1], [], []>} : vector<128x8xbf16>, vector<8x16xbf16>, vector<128x16xf32> -> vector<128x16xf32>
    %89 = arith.addf %82, %88 : vector<128x16xf32>
    %c0_91 = arith.constant 0 : index
    %c2_92 = arith.constant 2 : index
    %c0_93 = arith.constant 0 : index
    %c0_94 = arith.constant 0 : index
    %90 = vector.load %arg7[%c0_91, %c2_92, %c0_93, %c0_94] : memref<2x10x10x8xf32, #tpu.memory_space<vmem>>, vector<2x8x8x8xf32>
    %91 = vector.shape_cast %90 : vector<2x8x8x8xf32> to vector<128x8xf32>
    %92 = arith.truncf %91 : vector<128x8xf32> to vector<128x8xbf16>
    %c6 = arith.constant 6 : index
    %c0_95 = arith.constant 0 : index
    %c0_96 = arith.constant 0 : index
    %93 = vector.load %arg3[%c6, %c0_95, %c0_96] : memref<9x8x16xbf16, #tpu.memory_space<vmem>>, vector<1x8x16xbf16>
    %94 = vector.shape_cast %93 : vector<1x8x16xbf16> to vector<8x16xbf16>
    %cst_97 = arith.constant dense<0.000000e+00> : vector<128x16xf32>
    %95 = tpu.matmul %92, %94, %cst_97 {dimension_numbers = #tpu.dot_dimension_numbers<[1], [0], [0], [1], [0, 0, 1, 1], [], []>} : vector<128x8xbf16>, vector<8x16xbf16>, vector<128x16xf32> -> vector<128x16xf32>
    %96 = arith.addf %89, %95 : vector<128x16xf32>
    %c0_98 = arith.constant 0 : index
    %c2_99 = arith.constant 2 : index
    %c1_100 = arith.constant 1 : index
    %c0_101 = arith.constant 0 : index
    %97 = vector.load %arg7[%c0_98, %c2_99, %c1_100, %c0_101] : memref<2x10x10x8xf32, #tpu.memory_space<vmem>>, vector<2x8x8x8xf32>
    %98 = vector.shape_cast %97 : vector<2x8x8x8xf32> to vector<128x8xf32>
    %99 = arith.truncf %98 : vector<128x8xf32> to vector<128x8xbf16>
    %c7 = arith.constant 7 : index
    %c0_102 = arith.constant 0 : index
    %c0_103 = arith.constant 0 : index
    %100 = vector.load %arg3[%c7, %c0_102, %c0_103] : memref<9x8x16xbf16, #tpu.memory_space<vmem>>, vector<1x8x16xbf16>
    %101 = vector.shape_cast %100 : vector<1x8x16xbf16> to vector<8x16xbf16>
    %cst_104 = arith.constant dense<0.000000e+00> : vector<128x16xf32>
    %102 = tpu.matmul %99, %101, %cst_104 {dimension_numbers = #tpu.dot_dimension_numbers<[1], [0], [0], [1], [0, 0, 1, 1], [], []>} : vector<128x8xbf16>, vector<8x16xbf16>, vector<128x16xf32> -> vector<128x16xf32>
    %103 = arith.addf %96, %102 : vector<128x16xf32>
    %c0_105 = arith.constant 0 : index
    %c2_106 = arith.constant 2 : index
    %c2_107 = arith.constant 2 : index
    %c0_108 = arith.constant 0 : index
    %104 = vector.load %arg7[%c0_105, %c2_106, %c2_107, %c0_108] : memref<2x10x10x8xf32, #tpu.memory_space<vmem>>, vector<2x8x8x8xf32>
    %105 = vector.shape_cast %104 : vector<2x8x8x8xf32> to vector<128x8xf32>
    %106 = arith.truncf %105 : vector<128x8xf32> to vector<128x8xbf16>
    %c8 = arith.constant 8 : index
    %c0_109 = arith.constant 0 : index
    %c0_110 = arith.constant 0 : index
    %107 = vector.load %arg3[%c8, %c0_109, %c0_110] : memref<9x8x16xbf16, #tpu.memory_space<vmem>>, vector<1x8x16xbf16>
    %108 = vector.shape_cast %107 : vector<1x8x16xbf16> to vector<8x16xbf16>
    %cst_111 = arith.constant dense<0.000000e+00> : vector<128x16xf32>
    %109 = tpu.matmul %106, %108, %cst_111 {dimension_numbers = #tpu.dot_dimension_numbers<[1], [0], [0], [1], [0, 0, 1, 1], [], []>} : vector<128x8xbf16>, vector<8x16xbf16>, vector<128x16xf32> -> vector<128x16xf32>
    %110 = arith.addf %103, %109 : vector<128x16xf32>
    %c0_112 = arith.constant 0 : index
    %c0_113 = arith.constant 0 : index
    %111 = vector.load %arg5[%c0_112, %c0_113] : memref<1x16xf32, #tpu.memory_space<vmem>>, vector<1x16xf32>
    %112 = vector.broadcast %111 : vector<1x16xf32> to vector<128x16xf32>
    %113 = arith.addf %110, %112 : vector<128x16xf32>
    %114 = vector.shape_cast %113 : vector<128x16xf32> to vector<2x8x8x16xf32>
    %c0_114 = arith.constant 0 : index
    %c0_115 = arith.constant 0 : index
    %c0_116 = arith.constant 0 : index
    %c0_117 = arith.constant 0 : index
    %115 = vector.load %arg6[%c0_114, %c0_115, %c0_116, %c0_117] : memref<2x8x8x16xf32, #tpu.memory_space<vmem>>, vector<2x8x8x16xf32>
    tpu.vector_store %arg6[%c0_114, %c0_115, %c0_116, %c0_117], %114 {strides = array<i32>} : memref<2x8x8x16xf32, #tpu.memory_space<vmem>>, vector<2x8x8x16xf32>,
    return
  }
  func.func @transform_0(%arg0: i32) -> (i32, i32, i32, i32) {
    %c0_i32 = arith.constant 0 : i32
    %c0_i32_0 = arith.constant 0 : i32
    %c0_i32_1 = arith.constant 0 : i32
    %c0_i32_2 = arith.constant 0 : i32
    return %arg0, %c0_i32, %c0_i32_0, %c0_i32_1 : i32, i32, i32, i32
  }
  func.func @transform_1(%arg0: i32) -> (i32, i32, i32) {
    %c0_i32 = arith.constant 0 : i32
    %c0_i32_0 = arith.constant 0 : i32
    %c0_i32_1 = arith.constant 0 : i32
    %c0_i32_2 = arith.constant 0 : i32
    return %c0_i32, %c0_i32_0, %c0_i32_1 : i32, i32, i32
  }
  func.func @transform_2(%arg0: i32) -> (i32, i32, i32) {
    %c0_i32 = arith.constant 0 : i32
    %c0_i32_0 = arith.constant 0 : i32
    %c0_i32_1 = arith.constant 0 : i32
    %c0_i32_2 = arith.constant 0 : i32
    return %c0_i32, %c0_i32_0, %c0_i32_1 : i32, i32, i32
  }
  func.func @transform_3(%arg0: i32) -> (i32, i32) {
    %c0_i32 = arith.constant 0 : i32
    %c0_i32_0 = arith.constant 0 : i32
    %c0_i32_1 = arith.constant 0 : i32
    return %c0_i32, %c0_i32_0 : i32, i32
  }
  func.func @transform_4(%arg0: i32) -> (i32, i32) {
    %c0_i32 = arith.constant 0 : i32
    %c0_i32_0 = arith.constant 0 : i32
    %c0_i32_1 = arith.constant 0 : i32
    return %c0_i32, %c0_i32_0 : i32, i32
  }
  func.func @transform_5(%arg0: i32) -> (i32, i32, i32, i32) {
    %c0_i32 = arith.constant 0 : i32
    %c0_i32_0 = arith.constant 0 : i32
    %c0_i32_1 = arith.constant 0 : i32
    %c0_i32_2 = arith.constant 0 : i32
    return %arg0, %c0_i32, %c0_i32_0, %c0_i32_1 : i32, i32, i32, i32
  }
}

</mosaic_0001>

<bundles_post_ra>
// kernel: _lambda_.1
= control target key start
LH: loop header
LB: loop body
LE: loop exit
PB: predicated region body
PF: predicated region fallthrough
CT: control target
= control target key end

     0   :  { %vm317_vm8 = vsmask.f32 3328  ;;  %vm318_vm9 = vsmask.f32 7440  ;;  %vm577_vm10 = vcmask 130048   ;;  %s4550_s1 = inlined_call_operand.vmem [shape: bf16[4,16,8], index: 1, kind: input, shape index: {}]   ;;  %s4551_s0 = inlined_call_operand.vmem [shape: f32[2,9,9,16], index: 0, kind: input, shape index: {}]   ;;  %s4552_s2 = inlined_call_operand.vmem [shape: bf16[9,8,16], index: 2, kind: input, shape index: {}]   ;;  %s4553_s3 = inlined_call_operand.vmem [shape: f32[1,8], index: 3, kind: input, shape index: {}]   ;;  %s4554_s4 = inlined_call_operand.vmem [shape: f32[1,16], index: 4, kind: input, shape index: {}]   ;;  %s4555_s5 = inlined_call_operand.vmem [shape: f32[2,8,8,16], index: 5, kind: output, shape index: {}]  }
   0x1   :  { %v3351_v0 = vld [vmem:[%s4550_s1 + $0x8] sm:$0xff]   ;;  %v91_v1 = vld [vmem:[%s4551_s0 + $0x90] sm:$0xff]  ;;  %v92_v2 = vld [vmem:[%s4551_s0 + $0x98] sm:$0x1] }
   0x2   :  { %v93_v3 = vld [vmem:[%s4551_s0 + $0xa0] sm:$0xff]  ;;  %3339 = vmatprep.subr.bf16.mxu1 %v3351_v0  ;;  %3105 = vmatprep.subr.bf16.mxu0 %v3351_v0  ;;  %v94_v4 = vld [vmem:[%s4551_s0 + $0xa8] sm:$0x1]  ;;  %v95_v5 = vld [vmem:[%s4551_s0 + $0xb0] sm:$0xff]  ;;  %vm127_vm0 = vcmp.ge.f32.partialorder %v91_v1, 0.0  ;;  %vm128_vm1 = vcmp.ge.f32.partialorder %v92_v2, 0.0 }
   0x3   :  { %v96_v6 = vld [vmem:[%s4551_s0 + $0xb8] sm:$0x1]  ;;  %3340 = vmatpush3.bf16.msra.mxu1 %v3351_v0  ;;  %3106 = vmatpush3.bf16.msra.mxu0 %v3351_v0  ;;  %v97_v7 = vld [vmem:[%s4551_s0 + $0xc0] sm:$0xff]  ;;  %v98_v8 = vld [vmem:[%s4551_s0 + $0xc8] sm:$0x1]  ;;  %vm129_vm2 = vcmp.ge.f32.partialorder %v93_v3, 0.0 }
   0x4   :  { %vm130_vm3 = vcmp.ge.f32.partialorder %v94_v4, 0.0  ;;  %vm131_vm4 = vcmp.ge.f32.partialorder %v95_v5, 0.0  ;;  %vm132_vm5 = vcmp.ge.f32.partialorder %v96_v6, 0.0  ;;  %vm133_vm6 = vcmp.ge.f32.partialorder %v97_v7, 0.0  ;;  %v3428_v23 = vld [vmem:[%s4550_s1] sm:$0xff]   ;;  %vm3451_vm11 = vmor %vm317_vm8, %vm318_vm9  ;;  %v75_v59 = vld [vmem:[%s4551_s0 + $0x10] sm:$0xff] }
   0x5   :  { %vm134_vm7 = vcmp.ge.f32.partialorder %v98_v8, 0.0  ;;  %v163_v9 = vmul.f32 0.2, %v91_v1  ;;  %v164_v10 = vmul.f32 0.2, %v92_v2  ;;  %3123 = vmatprep.subr.bf16.mxu1 %v3428_v23  ;;  %v73_v52 = vld [vmem:[%s4551_s0] sm:$0xff] }
   0x6   :  { %v165_v11 = vmul.f32 0.2, %v93_v3  ;;  %v166_v12 = vmul.f32 0.2, %v94_v4  ;;  %v167_v13 = vmul.f32 0.2, %v95_v5 }
   0x7   :  { %v168_v14 = vmul.f32 0.2, %v96_v6  ;;  %v169_v15 = vmul.f32 0.2, %v97_v7  ;;  %v170_v16 = vmul.f32 0.2, %v98_v8  ;;  %v3414_v17 = vsel %vm127_vm0, %v91_v1, %v163_v9 }
   0x8   :  { %v200_v18 = vsel %vm128_vm1, %v92_v2, %v164_v10  ;;  %v3418_v19 = vsel %vm129_vm2, %v93_v3, %v165_v11  ;;  %v202_v20 = vsel %vm130_vm3, %v94_v4, %v166_v12  ;;  %v3422_v21 = vsel %vm131_vm4, %v95_v5, %v167_v13  ;;  %v74_v53 = vld [vmem:[%s4551_s0 + $0x8] sm:$0x1]  ;;  %v76_v60 = vld [vmem:[%s4551_s0 + $0x18] sm:$0x1]  ;;  %v77_v0 = vld [vmem:[%s4551_s0 + $0x20] sm:$0xff] }
   0x9   :  { %v204_v22 = vsel %vm132_vm5, %v96_v6, %v168_v14  ;;  %v3431_v24 = vsel %vm133_vm6, %v97_v7, %v169_v15  ;;  %v206_v25 = vsel %vm134_vm7, %v98_v8, %v170_v16  ;;  %v2952_v26 = vpack.c.bf16 %v3414_v17, %v3414_v17  ;;  %v78_v1 = vld [vmem:[%s4551_s0 + $0x28] sm:$0x1]  ;;  %v79_v2 = vld [vmem:[%s4551_s0 + $0x30] sm:$0xff]  ;;  %v80_v6 = vld [vmem:[%s4551_s0 + $0x38] sm:$0x1] }
   0xa   :  { %v2953_v27 = vpack.c.bf16 %v200_v18, %v200_v18  ;;  %v2954_v28 = vpack.c.bf16 %v3418_v19, %v3418_v19  ;;  %v2955_v29 = vpack.c.bf16 %v202_v20, %v202_v20  ;;  %v2956_v30 = vpack.c.bf16 %v3422_v21, %v3422_v21  ;;  %v81_v10 = vld [vmem:[%s4551_s0 + $0x40] sm:$0xff]  ;;  %v82_v11 = vld [vmem:[%s4551_s0 + $0x48] sm:$0x1]  ;;  %v3493_v16 = vld [vmem:[%s4550_s1 + $0x10] sm:$0xff]  }
   0xb   :  { %v2957_v31 = vpack.c.bf16 %v204_v22, %v204_v22  ;;  %v2958_v32 = vpack.c.bf16 %v3431_v24, %v3431_v24  ;;  %v2959_v33 = vpack.c.bf16 %v206_v25, %v206_v25  ;;  %v433_v34 = vshrl.u32 %v2952_v26, 16  ;;  %3141 = vmatprep.subr.bf16.mxu0 %v3493_v16  ;;  %v2855_v54 = vld [vmem:[%s4552_s2 + $0x4] sm:$0xf] }
   0xc   :  { %v436_v35 = vshll.u32 %v2952_v26, 16  ;;  %v442_v36 = vshll.u32 %v2953_v27, 16  ;;  %v447_v37 = vshrl.u32 %v2954_v28, 16  ;;  %v450_v38 = vshll.u32 %v2954_v28, 16  ;;  %v3502_v26 = vld [vmem:[%s4550_s1 + $0x18] sm:$0xff]  }
   0xd   :  { %v456_v39 = vshll.u32 %v2955_v29, 16  ;;  %v435_v40 = vrot.slane %v433_v34, 4  ;;  %v461_v42 = vshrl.u32 %v2956_v30, 16  ;;  %v464_v43 = vshll.u32 %v2956_v30, 16 }
   0xe   :  { %v438_v41 = vrot.slane %v436_v35, 5  ;;  %v444_v44 = vrot.slane %v442_v36, 5  ;;  %v449_v45 = vrot.slane %v447_v37, 4  ;;  %v452_v46 = vrot.slane %v450_v38, 5 }
   0xf   :  { %v458_v47 = vrot.slane %v456_v39, 5  ;;  %v463_v49 = vrot.slane %v461_v42, 4  ;;  %v466_v50 = vrot.slane %v464_v43, 5  ;;  %v470_v51 = vshll.u32 %v2957_v31, 16 }
  0x10   :  { %v439_v48 = vor.u32 %v438_v41, %v435_v40  ;;  %v453_v55 = vor.u32 %v452_v46, %v449_v45  ;;  %v475_v56 = vshrl.u32 %v2958_v32, 16  ;;  %v478_v57 = vshll.u32 %v2958_v32, 16 }
  0x11   :  { %v484_v58 = vshll.u32 %v2959_v33, 16  ;;  %v467_v62 = vor.u32 %v466_v50, %v463_v49  ;;  %v472_v63 = vrot.slane %v470_v51, 5  ;;  %vm109_vm12 = vcmp.ge.f32.partialorder %v73_v52, 0.0 }
  0x12   :  { %v440_v61 = vrot.slane %v439_v48, 4  ;;  %v454_v3 = vrot.slane %v453_v55, 4  ;;  %v477_v4 = vrot.slane %v475_v56, 4  ;;  %v480_v5 = vrot.slane %v478_v57, 5 }
  0x13   :  { %v468_v8 = vrot.slane %v467_v62, 4  ;;  %v486_v9 = vrot.slane %v484_v58, 5  ;;  %vm110_vm13 = vcmp.ge.f32.partialorder %v74_v53, 0.0  ;;  %vm111_vm14 = vcmp.ge.f32.partialorder %v75_v59, 0.0 }
  0x14   :  { %v445_v7 = vsel %vm3451_vm11, %v440_v61, %v444_v44  ;;  %v3483_v12 = vsel %vm3451_vm11, %v454_v3, %v458_v47  ;;  %v481_v13 = vor.u32 %v480_v5, %v477_v4  ;;  %vm112_vm15 = vcmp.ge.f32.partialorder %v76_v60, 0.0 }
  0x15   :  { %v3487_v14 = vsel %vm3451_vm11, %v468_v8, %v472_v63  ;;  %v2782_v15 = vcombine.low %v445_v7, %v3483_v12  ;;  %vm113_vm0 = vcmp.ge.f32.partialorder %v77_v0, 0.0  ;;  %vm114_vm1 = vcmp.ge.f32.partialorder %v78_v1, 0.0 }
  0x16   :  { %v482_v18 = vrot.slane %v481_v13, 4  ;;  %v2841_v20 = vcombine.low %v3483_v12, %v3487_v14  ;;  %vm115_vm2 = vcmp.ge.f32.partialorder %v79_v2, 0.0  ;;  %vm116_vm3 = vcmp.ge.f32.partialorder %v80_v6, 0.0 }
  0x17   :  { %3115 = vmatprep.mubr.msk.bf16.mxu1 %vm577_vm10, %v2782_v15  ;;  %vm117_vm4 = vcmp.ge.f32.partialorder %v81_v10, 0.0  ;;  %vm118_vm5 = vcmp.ge.f32.partialorder %v82_v11, 0.0  ;;  %v145_v22 = vmul.f32 0.2, %v73_v52  ;;  %v146_v25 = vmul.f32 0.2, %v74_v53 }
  0x18   :  { %v3506_v27 = vsel %vm3451_vm11, %v482_v18, %v486_v9  ;;  %v147_v28 = vmul.f32 0.2, %v75_v59  ;;  %v148_v29 = vmul.f32 0.2, %v76_v60  ;;  %v149_v30 = vmul.f32 0.2, %v77_v0 }
  0x19   :  { %v2783_v31 = vcombine.low %v3487_v14, %v3506_v27  ;;  %v150_v32 = vmul.f32 0.2, %v78_v1  ;;  %v151_v33 = vmul.f32 0.2, %v79_v2  ;;  %v152_v34 = vmul.f32 0.2, %v80_v6 }
  0x1a   :  { %v153_v35 = vmul.f32 0.2, %v81_v10  ;;  %v154_v36 = vmul.f32 0.2, %v82_v11  ;;  %v3511_v37 = vsel %vm109_vm12, %v73_v52, %v145_v22  ;;  %v182_v38 = vsel %vm110_vm13, %v74_v53, %v146_v25 }
  0x1b   :  { %3116 = vmatmul.mubr.msk.bf16.vlgmr.msra.gmra.mxu1 %vm577_vm10, %v2783_v31  ;;  %v3516_v39 = vsel %vm111_vm14, %v75_v59, %v147_v28  ;;  %v184_v40 = vsel %vm112_vm15, %v76_v60, %v148_v29  ;;  %v3520_v41 = vsel %vm113_vm0, %v77_v0, %v149_v30  ;;  %v186_v42 = vsel %vm114_vm1, %v78_v1, %v150_v32  ;;  %v99_v29 = vld [vmem:[%s4551_s0 + $0xd0] sm:$0xff] }
  0x1c   :  { %3124 = vmatpush3.bf16.msra.mxu1 %v3428_v23  ;;  %v3525_v43 = vsel %vm115_vm2, %v79_v2, %v151_v33  ;;  %v188_v44 = vsel %vm116_vm3, %v80_v6, %v152_v34  ;;  %v3529_v45 = vsel %vm117_vm4, %v81_v10, %v153_v35  ;;  %v190_v46 = vsel %vm118_vm5, %v82_v11, %v154_v36  ;;  %v100_v34 = vld [vmem:[%s4551_s0 + $0xd8] sm:$0x1] }
  0x1d   :  { %v2936_v47 = vpack.c.bf16 %v3511_v37, %v3511_v37  ;;  %v2937_v48 = vpack.c.bf16 %v182_v38, %v182_v38  ;;  %v2938_v49 = vpack.c.bf16 %v3516_v39, %v3516_v39  ;;  %v2939_v50 = vpack.c.bf16 %v184_v40, %v184_v40  ;;  %3159 = vmatprep.subr.bf16.mxu1 %v3502_v26 }
  0x1e   :  { %v2940_v23 = vpack.c.bf16 %v3520_v41, %v3520_v41  ;;  %v2941_v51 = vpack.c.bf16 %v186_v42, %v186_v42  ;;  %v2942_v52 = vpack.c.bf16 %v3525_v43, %v3525_v43  ;;  %v2943_v53 = vpack.c.bf16 %v188_v44, %v188_v44  ;;  %v101_v42 = vld [vmem:[%s4551_s0 + $0xe0] sm:$0xff]  ;;  %v102_v44 = vld [vmem:[%s4551_s0 + $0xe8] sm:$0x1] }
  0x1f   :  { %v2944_v55 = vpack.c.bf16 %v3529_v45, %v3529_v45  ;;  %v2945_v56 = vpack.c.bf16 %v190_v46, %v190_v46  ;;  %v321_v57 = vshrl.u32 %v2936_v47, 16  ;;  %v324_v58 = vshll.u32 %v2936_v47, 16 }
  0x20   :  { %v330_v59 = vshll.u32 %v2937_v48, 16  ;;  %v335_v60 = vshrl.u32 %v2938_v49, 16  ;;  %v338_v61 = vshll.u32 %v2938_v49, 16  ;;  %v344_v62 = vshll.u32 %v2939_v50, 16 }
  0x21   :  { %v323_v63 = vrot.slane %v321_v57, 4  ;;  %v326_v0 = vrot.slane %v324_v58, 5  ;;  %v349_v1 = vshrl.u32 %v2940_v23, 16  ;;  %v352_v2 = vshll.u32 %v2940_v23, 16 }
  0x22   :  { %v332_v3 = vrot.slane %v330_v59, 5  ;;  %v337_v4 = vrot.slane %v335_v60, 4  ;;  %v340_v5 = vrot.slane %v338_v61, 5  ;;  %v346_v6 = vrot.slane %v344_v62, 5  ;;  %v104_v62 = vld [vmem:[%s4551_s0 + $0xf8] sm:$0x1] }
  0x23   :  { %v327_v7 = vor.u32 %v326_v0, %v323_v63  ;;  %v351_v8 = vrot.slane %v349_v1, 4  ;;  %v354_v9 = vrot.slane %v352_v2, 5  ;;  %v358_v10 = vshll.u32 %v2941_v51, 16  ;;  %v105_v2 = vld [vmem:[%s4551_s0 + $0x100] sm:$0xff] }
  0x24   :  { %v341_v11 = vor.u32 %v340_v5, %v337_v4  ;;  %v363_v13 = vshrl.u32 %v2942_v52, 16  ;;  %v366_v15 = vshll.u32 %v2942_v52, 16  ;;  %v372_v18 = vshll.u32 %v2943_v53, 16  ;;  %v103_v53 = vld [vmem:[%s4551_s0 + $0xf0] sm:$0xff] }
  0x25   :  { %v328_v22 = vrot.slane %v327_v7, 4  ;;  %v355_v25 = vor.u32 %v354_v9, %v351_v8  ;;  %v377_v28 = vshrl.u32 %v2944_v55, 16  ;;  %v360_v31 = vrot.slane %v358_v10, 5  ;;  %v106_v7 = vld [vmem:[%s4551_s0 + $0x108] sm:$0x1] }
  0x26   :  { %v342_v30 = vrot.slane %v341_v11, 4  ;;  %v365_v32 = vrot.slane %v363_v13, 4  ;;  %v368_v33 = vrot.slane %v366_v15, 5  ;;  %v380_v40 = vshll.u32 %v2944_v55, 16 }
  0x27   :  { %v333_v35 = vsel %vm3451_vm11, %v328_v22, %v332_v3  ;;  %v356_v36 = vrot.slane %v355_v25, 4  ;;  %v379_v38 = vrot.slane %v377_v28, 4  ;;  %v374_v48 = vrot.slane %v372_v18, 5 }
  0x28   :  { %v3559_v46 = vsel %vm3451_vm11, %v342_v30, %v346_v6  ;;  %v369_v47 = vor.u32 %v368_v33, %v365_v32  ;;  %v3561_v49 = vshll.u32 %v2945_v56, 16  ;;  %v382_v50 = vrot.slane %v380_v40, 5  ;;  %v83_v32 = vld [vmem:[%s4551_s0 + $0x50] sm:$0xff] }
  0x29   :  { %v2778_v23 = vcombine.low %v333_v35, %v3559_v46  ;;  %vm135_vm6 = vcmp.ge.f32.partialorder %v99_v29, 0.0  ;;  %vm136_vm7 = vcmp.ge.f32.partialorder %v100_v34, 0.0  ;;  %v3566_v51 = vsel %vm3451_vm11, %v356_v36, %v360_v31 }
  0x2a   :  { %v370_v52 = vrot.slane %v369_v47, 4  ;;  %vm137_vm8 = vcmp.ge.f32.partialorder %v101_v42, 0.0  ;;  %vm138_vm9 = vcmp.ge.f32.partialorder %v102_v44, 0.0  ;;  %v383_v55 = vor.u32 %v382_v50, %v379_v38  ;;  %v84_v50 = vld [vmem:[%s4551_s0 + $0x58] sm:$0x1] }
  0x2b   :  { %3107 = vmatprep.mubr.msk.bf16.mxu0 %vm577_vm10, %v2778_v23  ;;  %v171_v56 = vmul.f32 0.2, %v99_v29  ;;  %v172_v57 = vmul.f32 0.2, %v100_v34  ;;  %v173_v58 = vmul.f32 0.2, %v101_v42 }
  0x2c   :  { %v3574_v59 = vsel %vm3451_vm11, %v370_v52, %v374_v48  ;;  %v388_v60 = vrot.slane %v3561_v49, 5  ;;  %v174_v61 = vmul.f32 0.2, %v102_v44  ;;  %vm139_vm12 = vcmp.ge.f32.partialorder %v103_v53, 0.0 }
  0x2d   :  { %v2779_v63 = vcombine.low %v3566_v51, %v3574_v59  ;;  %v3583_v0 = vsel %vm135_vm6, %v99_v29, %v171_v56  ;;  %v208_v1 = vsel %vm136_vm7, %v100_v34, %v172_v57  ;;  %v3590_v3 = vsel %vm137_vm8, %v101_v42, %v173_v58 }
  0x2e   :  { %v210_v4 = vsel %vm138_vm9, %v102_v44, %v174_v61  ;;  %v2960_v5 = vpack.c.bf16 %v3583_v0, %v3583_v0  ;;  %v2961_v6 = vpack.c.bf16 %v208_v1, %v208_v1  ;;  %v3598_v8 = vrot.slane %v383_v55, 4 }
  0x2f   :  { %3108 = vmatmul.mubr.msk.bf16.vlgmr.msra.gmra.mxu0 %vm577_vm10, %v2779_v63  ;;  %v2962_v9 = vpack.c.bf16 %v3590_v3, %v3590_v3  ;;  %v2963_v10 = vpack.c.bf16 %v210_v4, %v210_v4  ;;  %vm140_vm13 = vcmp.ge.f32.partialorder %v104_v62, 0.0  ;;  %vm141_vm14 = vcmp.ge.f32.partialorder %v105_v2, 0.0 }
  0x30   :  { %v489_v11 = vshrl.u32 %v2960_v5, 16  ;;  %v492_v13 = vshll.u32 %v2960_v5, 16  ;;  %v498_v15 = vshll.u32 %v2961_v6, 16  ;;  %3142 = vmatpush3.bf16.msra.mxu0 %v3493_v16  ;;  %vm142_vm15 = vcmp.ge.f32.partialorder %v106_v7, 0.0 }
  0x31   :  { %v503_v18 = vshrl.u32 %v2962_v9, 16  ;;  %v506_v22 = vshll.u32 %v2962_v9, 16  ;;  %v512_v25 = vshll.u32 %v2963_v10, 16  ;;  %v175_v31 = vmul.f32 0.2, %v103_v53 }
  0x32   :  { %v491_v28 = vrot.slane %v489_v11, 4  ;;  %v494_v29 = vrot.slane %v492_v13, 5  ;;  %v500_v30 = vrot.slane %v498_v15, 5  ;;  %v176_v36 = vmul.f32 0.2, %v104_v62 }
  0x33   :  { %v505_v33 = vrot.slane %v503_v18, 4  ;;  %v508_v34 = vrot.slane %v506_v22, 5  ;;  %v514_v35 = vrot.slane %v512_v25, 5  ;;  %v177_v40 = vmul.f32 0.2, %v105_v2  ;;  %v87_v18 = vld [vmem:[%s4551_s0 + $0x70] sm:$0xff] }
  0x34   :  { %v495_v38 = vor.u32 %v494_v29, %v491_v28  ;;  %v178_v42 = vmul.f32 0.2, %v106_v7  ;;  %v3608_v16 = vsel %vm139_vm12, %v103_v53, %v175_v31  ;;  %v212_v47 = vsel %vm140_vm13, %v104_v62, %v176_v36  ;;  %v86_v9 = vld [vmem:[%s4551_s0 + $0x68] sm:$0x1]  ;;  %v88_v22 = vld [vmem:[%s4551_s0 + $0x78] sm:$0x1] }
  0x35   :  { %v509_v44 = vor.u32 %v508_v34, %v505_v33  ;;  %v2964_v48 = vpack.c.bf16 %v3608_v16, %v3608_v16  ;;  %vm119_vm0 = vcmp.ge.f32.partialorder %v83_v32, 0.0  ;;  %v3617_v52 = vsel %vm141_vm14, %v105_v2, %v177_v40 }
  0x36   :  { %v496_v23 = vrot.slane %v495_v38, 4  ;;  %v214_v55 = vsel %vm142_vm15, %v106_v7, %v178_v42  ;;  %v2965_v56 = vpack.c.bf16 %v212_v47, %v212_v47  ;;  %v2966_v57 = vpack.c.bf16 %v3617_v52, %v3617_v52  ;;  %v85_v7 = vld [vmem:[%s4551_s0 + $0x60] sm:$0xff] }
  0x37   :  { %v510_v53 = vrot.slane %v509_v44, 4  ;;  %v2967_v58 = vpack.c.bf16 %v214_v55, %v214_v55  ;;  %v517_v61 = vshrl.u32 %v2964_v48, 16  ;;  %v520_v63 = vshll.u32 %v2964_v48, 16 }
  0x38   :  { %v3624_v62 = vsel %vm3451_vm11, %v496_v23, %v500_v30  ;;  %v526_v1 = vshll.u32 %v2965_v56, 16  ;;  %vm120_vm1 = vcmp.ge.f32.partialorder %v84_v50, 0.0  ;;  %v531_v5 = vshrl.u32 %v2966_v57, 16 }
  0x39   :  { %v3628_v2 = vsel %vm3451_vm11, %v510_v53, %v514_v35  ;;  %v519_v4 = vrot.slane %v517_v61, 4  ;;  %v534_v6 = vshll.u32 %v2966_v57, 16  ;;  %v522_v11 = vrot.slane %v520_v63, 5 }
  0x3a   :  { %v2784_v10 = vcombine.low %v3624_v62, %v3628_v2  ;;  %v528_v13 = vrot.slane %v526_v1, 5  ;;  %v540_v15 = vshll.u32 %v2967_v58, 16  ;;  %v533_v25 = vrot.slane %v531_v5, 4 }
  0x3b   :  { %v536_v28 = vrot.slane %v534_v6, 5  ;;  %v155_v29 = vmul.f32 0.2, %v83_v32  ;;  %v156_v30 = vmul.f32 0.2, %v84_v50  ;;  %v523_v31 = vor.u32 %v522_v11, %v519_v4 }
  0x3c   :  { %3119 = vmatprep.mubr.msk.bf16.mxu1 %vm577_vm10, %v2784_v10  ;;  %v542_v33 = vrot.slane %v540_v15, 5  ;;  %vm121_vm2 = vcmp.ge.f32.partialorder %v85_v7, 0.0  ;;  %vm122_vm3 = vcmp.ge.f32.partialorder %v86_v9, 0.0  ;;  %vm123_vm4 = vcmp.ge.f32.partialorder %v87_v18, 0.0 }
  0x3d   :  { %v537_v34 = vor.u32 %v536_v28, %v533_v25  ;;  %v3646_v35 = vsel %vm119_vm0, %v83_v32, %v155_v29  ;;  %v192_v36 = vsel %vm120_vm1, %v84_v50, %v156_v30  ;;  %v524_v38 = vrot.slane %v523_v31, 4 }
  0x3e   :  { %v2946_v40 = vpack.c.bf16 %v3646_v35, %v3646_v35  ;;  %v2947_v42 = vpack.c.bf16 %v192_v36, %v192_v36  ;;  %vm124_vm5 = vcmp.ge.f32.partialorder %v88_v22, 0.0  ;;  %v157_v47 = vmul.f32 0.2, %v85_v7 }
  0x3f   :  { %v538_v44 = vrot.slane %v537_v34, 4  ;;  %v158_v48 = vmul.f32 0.2, %v86_v9  ;;  %v2968_v23 = vpack.c.bf16 %v3516_v39, %v3511_v37  ;;  %v3655_v55 = vsel %vm3451_vm11, %v524_v38, %v528_v13 }
  0x40   :  { %v391_v32 = vshrl.u32 %v2946_v40, 16  ;;  %v394_v56 = vshll.u32 %v2946_v40, 16  ;;  %v400_v50 = vshll.u32 %v2947_v42, 16  ;;  %v159_v57 = vmul.f32 0.2, %v87_v18 }
  0x41   :  { %v3659_v53 = vsel %vm3451_vm11, %v538_v44, %v542_v33  ;;  %v160_v58 = vmul.f32 0.2, %v88_v22  ;;  %v3662_v61 = vsel %vm121_vm2, %v85_v7, %v157_v47  ;;  %v194_v5 = vsel %vm122_vm3, %v86_v9, %v158_v48 }
  0x42   :  { %v2785_v63 = vcombine.low %v3655_v55, %v3659_v53  ;;  %v393_v37 = vrot.slane %v391_v32, 4  ;;  %v396_v1 = vrot.slane %v394_v56, 5  ;;  %v402_v4 = vrot.slane %v400_v50, 5  ;;  %v107_v56 = vld [vmem:[%s4551_s0 + $0x110] sm:$0xff] }
  0x43   :  { %v3668_v6 = vsel %vm123_vm4, %v87_v18, %v159_v57  ;;  %v196_v10 = vsel %vm124_vm5, %v88_v22, %v160_v58  ;;  %v2948_v11 = vpack.c.bf16 %v3662_v61, %v3662_v61  ;;  %v2949_v13 = vpack.c.bf16 %v194_v5, %v194_v5 }
  0x44   :  { %3120 = vmatmul.mubr.msk.bf16.gmra.mxu1 %vm577_vm10, %v2785_v63  ;;  %v397_v7 = vor.u32 %v396_v1, %v393_v37  ;;  %v2950_v15 = vpack.c.bf16 %v3668_v6, %v3668_v6  ;;  %v2951_v25 = vpack.c.bf16 %v196_v10, %v196_v10  ;;  %v3681_v9 = vsel %vm3451_vm11, %v3598_v8, %v388_v60  ;;  %v108_v37 = vld [vmem:[%s4551_s0 + $0x118] sm:$0x1] }
  0x45   :  { %v405_v18 = vshrl.u32 %v2948_v11, 16  ;;  %v408_v22 = vshll.u32 %v2948_v11, 16  ;;  %3125 = vmatprep.mubr.msk.bf16.mxu1 %vm577_vm10, %v2968_v23  ;;  %v414_v29 = vshll.u32 %v2949_v13, 16  ;;  %v2969_v60 = vpack.c.bf16 %v3525_v43, %v3520_v41 }
  0x46   :  { %v398_v28 = vrot.slane %v397_v7, 4  ;;  %v419_v30 = vshrl.u32 %v2950_v15, 16  ;;  %v422_v31 = vshll.u32 %v2950_v15, 16  ;;  %v428_v36 = vshll.u32 %v2951_v25, 16 }
  0x47   :  { %v407_v33 = vrot.slane %v405_v18, 4  ;;  %v410_v34 = vrot.slane %v408_v22, 5  ;;  %v416_v44 = vrot.slane %v414_v29, 5  ;;  %v2970_v47 = vpack.c.bf16 %v3646_v35, %v3529_v45 }
  0x48   :  { %v3686_v38 = vsel %vm3451_vm11, %v398_v28, %v402_v4  ;;  %v421_v49 = vrot.slane %v419_v30, 4  ;;  %v424_v40 = vrot.slane %v422_v31, 5  ;;  %v430_v23 = vrot.slane %v428_v36, 5  ;;  %v90_v31 = vld [vmem:[%s4551_s0 + $0x88] sm:$0x1] }
  0x49   :  { %v2780_v8 = vcombine.low %v3681_v9, %v3686_v38  ;;  %v411_v42 = vor.u32 %v410_v34, %v407_v33  ;;  %v2976_v63 = vpack.c.bf16 %v3520_v41, %v3516_v39  ;;  %vm143_vm6 = vcmp.ge.f32.partialorder %v107_v56, 0.0  ;;  %v89_v39 = vld [vmem:[%s4551_s0 + $0x80] sm:$0xff] }
  0x4a   :  { %v425_v48 = vor.u32 %v424_v40, %v421_v49  ;;  %v179_v4 = vmul.f32 0.2, %v107_v56  ;;  %v2842_v5 = vcombine.low %v3506_v27, %v3624_v62  ;;  %v2972_v41 = vpack.c.bf16 %v3418_v19, %v3414_v17 }
  0x4b   :  { %3111 = vmatprep.mubr.msk.bf16.mxu0 %vm577_vm10, %v2780_v8  ;;  %v412_v32 = vrot.slane %v411_v42, 4  ;;  %vm144_vm7 = vcmp.ge.f32.partialorder %v108_v37, 0.0  ;;  %v180_v11 = vmul.f32 0.2, %v108_v37  ;;  %v161_v15 = vmul.f32 0.2, %v89_v39 }
  0x4c   :  { %v426_v50 = vrot.slane %v425_v48, 4  ;;  %3126 = vmatmul.mubr.msk.bf16.vlgmr.msra.gmra.mxu1 %vm577_vm10, %v2969_v60  ;;  %v3726_v10 = vsel %vm143_vm6, %v107_v56, %v179_v4  ;;  %v2977_v22 = vpack.c.bf16 %v3529_v45, %v3525_v43  ;;  %vm125_vm8 = vcmp.ge.f32.partialorder %v89_v39, 0.0 }
  0x4d   :  { %v3701_v57 = vsel %vm3451_vm11, %v412_v32, %v416_v44  ;;  %3160 = vmatpush3.bf16.msra.mxu1 %v3502_v26  ;;  %3129 = vmatprep.mubr.msk.bf16.mxu1 %vm577_vm10, %v2970_v47  ;;  %v2971_v26 = vpack.c.bf16 %v3668_v6, %v3662_v61  ;;  %v2986_v7 = vpack.c.bf16 %v3726_v10, %v3726_v10  ;;  %vm126_vm9 = vcmp.ge.f32.partialorder %v90_v31, 0.0 }
  0x4e   :  { %v3707_v58 = vsel %vm3451_vm11, %v426_v50, %v430_v23  ;;  %v216_v13 = vsel %vm144_vm7, %v108_v37, %v180_v11  ;;  %v2978_v28 = vpack.c.bf16 %v3662_v61, %v3646_v35  ;;  %v197_v34 = vsel %vm125_vm8, %v89_v39, %v161_v15 }
  0x4f   :  { %v2781_v1 = vcombine.low %v3701_v57, %v3707_v58  ;;  %v1013_v25 = vshrl.u32 %v2986_v7, 16  ;;  %v1016_v18 = vshll.u32 %v2986_v7, 16  ;;  %v2987_v17 = vpack.c.bf16 %v216_v13, %v216_v13 }
  0x50   :  { %v2973_v36 = vpack.c.bf16 %v3431_v24, %v3422_v21  ;;  %v2984_v43 = vpack.c.bf16 %v197_v34, %v197_v34  ;;  %v2974_v45 = vpack.c.bf16 %v3590_v3, %v3583_v0  ;;  %v162_v35 = vmul.f32 0.2, %v90_v31 }
  0x51   :  { %3112 = vmatmul.mubr.msk.bf16.gmra.mxu0 %vm577_vm10, %v2781_v1  ;;  %v1015_v29 = vrot.slane %v1013_v25, 4  ;;  %v1018_v30 = vrot.slane %v1016_v18, 5  ;;  %v1022_v33 = vshll.u32 %v2987_v17, 16  ;;  %v2979_v8 = vpack.c.bf16 %v197_v34, %v3668_v6 }
  0x52   :  { %3143 = vmatprep.mubr.msk.bf16.mxu0 %vm577_vm10, %v2976_v63  ;;  %v999_v42 = vshrl.u32 %v2984_v43, 16  ;;  %v1002_v44 = vshll.u32 %v2984_v43, 16  ;;  %v2980_v48 = vpack.c.bf16 %v3422_v21, %v3418_v19  ;;  %v198_v23 = vsel %vm126_vm9, %v90_v31, %v162_v35 }
  0x53   :  { %v1019_v49 = vor.u32 %v1018_v30, %v1015_v29  ;;  %v1024_v40 = vrot.slane %v1022_v33, 5  ;;  %v2975_v32 = vpack.c.bf16 %v3617_v52, %v3608_v16  ;;  %v2837_v56 = vcombine.low %v3559_v46, %v3566_v51 }
  0x54   :  { %3130 = vmatmul.mubr.msk.bf16.gmra.mxu1 %vm577_vm10, %v2971_v26  ;;  %v1001_v50 = vrot.slane %v999_v42, 4  ;;  %v1004_v6 = vrot.slane %v1002_v44, 5  ;;  %v2985_v63 = vpack.c.bf16 %v198_v23, %v198_v23  ;;  %v2982_v37 = vpack.c.bf16 %v3608_v16, %v3590_v3  ;;  %v3854_v16 = vld [vmem:[%s4552_s2 + $0x8] sm:$0xf] }
  0x55   :  { %3133 = vmatprep.mubr.msk.bf16.mxu1 %vm577_vm10, %v2972_v41  ;;  %v1020_v61 = vrot.slane %v1019_v49, 4  ;;  %v2838_v46 = vcombine.low %v3574_v59, %v3681_v9  ;;  %v2839_v51 = vcombine.low %v3686_v38, %v3701_v57  ;;  %v2843_v3 = vcombine.low %v3628_v2, %v3655_v55 }
  0x56   :  { %v1005_v19 = vor.u32 %v1004_v6, %v1001_v50  ;;  %v1008_v21 = vshll.u32 %v2985_v63, 16  ;;  %vm21_vm12 = vcmask 64512   ;;  %vm32_vm13 = vcmask 57344  }
  0x57   :  { %v1025_v60 = vsel %vm3451_vm11, %v1020_v61, %v1024_v40  ;;  %v3355_v14 = vmov 0.0   ;;  %vm23_vm14 = vcmask 58368  }
  0x58   :  { %v2844_v47 = vcombine.low %v3659_v53, %v1025_v60  ;;  %v2981_v53 = vpack.c.bf16 %v3583_v0, %v3431_v24  ;;  %v1006_v1 = vrot.slane %v1005_v19, 4  ;;  %v1010_v4 = vrot.slane %v1008_v21, 5  ;;  %22 = vst.msk [vmem:[#allocation2] sm:$0xff] %vm21_vm12, %v3355_v14  ;;  %25 = vst.msk [vmem:[#allocation2 + $0xa0] sm:$0xff] %vm21_vm12, %v3355_v14  ;;  %v3896_v19 = vld [vmem:[%s4553_s3] ss:$0 sm:$0xff] }
  0x59   :  { %3144 = vmatmul.mubr.msk.bf16.vlgmr.msra.gmra.mxu0 %vm577_vm10, %v2977_v22  ;;  %v2983_v24 = vpack.c.bf16 %v3726_v10, %v3617_v52  ;;  %28 = vst.msk [vmem:[#allocation2 + $0x90] sm:$0xff] %vm21_vm12, %v3355_v14  ;;  %30 = vst.msk [vmem:[#allocation2 + $0x130] sm:$0xff] %vm21_vm12, %v3355_v14  ;;  %v3861_v52 = vld [vmem:[%s4552_s2 + $0xc] sm:$0xf] }
  0x5a   :  { %3147 = vmatprep.mubr.msk.bf16.mxu0 %vm577_vm10, %v2978_v28  ;;  %v1011_v0 = vsel %vm3451_vm11, %v1006_v1, %v1010_v4  ;;  %vm1313_vm11 = vcmask 1043456   ;;  %34 = vst.msk [vmem:[#allocation2 + $0x10] sm:$0x1] %vm32_vm13, %v3355_v14  ;;  %35 = vst.msk [vmem:[#allocation2 + $0x20] sm:$0x1] %vm32_vm13, %v3355_v14 }
  0x5b   :  { %v2840_v59 = vcombine.low %v3707_v58, %v1011_v0  ;;  %3341 = vmatprep.subr.msk.bf16.mxu0 %vm1313_vm11, %v2855_v54  ;;  %v1315_v12 = vsel %vm1313_vm11, %v2855_v54, 0  ;;  %36 = vst.msk [vmem:[#allocation2 + $0x30] sm:$0x1] %vm32_vm13, %v3355_v14  ;;  %37 = vst.msk [vmem:[#allocation2 + $0x40] sm:$0x1] %vm32_vm13, %v3355_v14 }
  0x5c   :  { %3134 = vmatmul.mubr.msk.bf16.gmra.mxu1 %vm577_vm10, %v2973_v36  ;;  %3178 = vmatpush3.bf16.msra.mxu0 %v1315_v12  ;;  %38 = vst.msk [vmem:[#allocation2 + $0x50] sm:$0x1] %vm32_vm13, %v3355_v14  ;;  %39 = vst.msk [vmem:[#allocation2 + $0x60] sm:$0x1] %vm32_vm13, %v3355_v14 }
  0x5d   :  { %3137 = vmatprep.mubr.msk.bf16.mxu1 %vm577_vm10, %v2974_v45  ;;  %40 = vst.msk [vmem:[#allocation2 + $0x70] sm:$0x1] %vm32_vm13, %v3355_v14  ;;  %41 = vst.msk [vmem:[#allocation2 + $0x80] sm:$0x1] %vm32_vm13, %v3355_v14  ;;  %3343 = vmatprep.subr.msk.bf16.mxu0 %vm1313_vm11, %v3854_v16 }
  0x5e   :  { %44 = vst.msk [vmem:[#allocation2 + $0xb0] sm:$0x1] %vm32_vm13, %v3355_v14  ;;  %45 = vst.msk [vmem:[#allocation2 + $0xc0] sm:$0x1] %vm32_vm13, %v3355_v14 }
  0x5f   :  { %46 = vst.msk [vmem:[#allocation2 + $0xd0] sm:$0x1] %vm32_vm13, %v3355_v14  ;;  %47 = vst.msk [vmem:[#allocation2 + $0xe0] sm:$0x1] %vm32_vm13, %v3355_v14 }
  0x60   :  { %48 = vst.msk [vmem:[#allocation2 + $0xf0] sm:$0x1] %vm32_vm13, %v3355_v14  ;;  %49 = vst.msk [vmem:[#allocation2 + $0x100] sm:$0x1] %vm32_vm13, %v3355_v14 }
  0x61   :  { %3148 = vmatmul.mubr.msk.bf16.gmra.mxu0 %vm577_vm10, %v2979_v8  ;;  %50 = vst.msk [vmem:[#allocation2 + $0x110] sm:$0x1] %vm32_vm13, %v3355_v14  ;;  %51 = vst.msk [vmem:[#allocation2 + $0x120] sm:$0x1] %vm32_vm13, %v3355_v14 }
  0x62   :  { %3151 = vmatprep.mubr.msk.bf16.mxu0 %vm577_vm10, %v2980_v48  ;;  %54 = vst.msk [vmem:[#allocation2 + $0x19] sm:$0x1] %vm32_vm13, %v3355_v14  ;;  %55 = vst.msk [vmem:[#allocation2 + $0x29] sm:$0x1] %vm32_vm13, %v3355_v14 }
  0x63   :  { %56 = vst.msk [vmem:[#allocation2 + $0x39] sm:$0x1] %vm32_vm13, %v3355_v14  ;;  %57 = vst.msk [vmem:[#allocation2 + $0x49] sm:$0x1] %vm32_vm13, %v3355_v14 }
  0x64   :  { %3138 = vmatmul.mubr.msk.bf16.gmra.mxu1 %vm577_vm10, %v2975_v32  ;;  %58 = vst.msk [vmem:[#allocation2 + $0x59] sm:$0x1] %vm32_vm13, %v3355_v14  ;;  %59 = vst.msk [vmem:[#allocation2 + $0x69] sm:$0x1] %vm32_vm13, %v3355_v14 }
  0x65   :  { %3161 = vmatprep.mubr.msk.bf16.mxu1 %vm577_vm10, %v2837_v56  ;;  %60 = vst.msk [vmem:[#allocation2 + $0x79] sm:$0x1] %vm32_vm13, %v3355_v14  ;;  %61 = vst.msk [vmem:[#allocation2 + $0x89] sm:$0x1] %vm32_vm13, %v3355_v14 }
  0x66   :  { %64 = vst.msk [vmem:[#allocation2 + $0xb9] sm:$0x1] %vm32_vm13, %v3355_v14  ;;  %65 = vst.msk [vmem:[#allocation2 + $0xc9] sm:$0x1] %vm32_vm13, %v3355_v14 }
  0x67   :  { %66 = vst.msk [vmem:[#allocation2 + $0xd9] sm:$0x1] %vm32_vm13, %v3355_v14  ;;  %67 = vst.msk [vmem:[#allocation2 + $0xe9] sm:$0x1] %vm32_vm13, %v3355_v14 }
  0x68   :  { %68 = vst.msk [vmem:[#allocation2 + $0xf9] sm:$0x1] %vm32_vm13, %v3355_v14  ;;  %69 = vst.msk [vmem:[#allocation2 + $0x109] sm:$0x1] %vm32_vm13, %v3355_v14 }
  0x69   :  { %3152 = vmatmul.mubr.msk.bf16.gmra.mxu0 %vm577_vm10, %v2981_v53  ;;  %70 = vst.msk [vmem:[#allocation2 + $0x119] sm:$0x1] %vm32_vm13, %v3355_v14  ;;  %71 = vst.msk [vmem:[#allocation2 + $0x129] sm:$0x1] %vm32_vm13, %v3355_v14 }
  0x6a   :  { %3155 = vmatprep.mubr.msk.bf16.mxu0 %vm577_vm10, %v2982_v37  ;;  %24 = vst.msk [vmem:[#allocation2 + $0x8] sm:$0x3] %vm23_vm14, %v3355_v14  ;;  %26 = vst.msk [vmem:[#allocation2 + $0xa8] sm:$0x3] %vm23_vm14, %v3355_v14 }
  0x6b   :  { %29 = vst.msk [vmem:[#allocation2 + $0x98] sm:$0x3] %vm23_vm14, %v3355_v14  ;;  %31 = vst.msk [vmem:[#allocation2 + $0x138] sm:$0x3] %vm23_vm14, %v3355_v14 }
  0x6c   :  { %3162 = vmatmul.mubr.msk.bf16.vlgmr.msra.gmra.mxu1 %vm577_vm10, %v2838_v46  ;;  %33 = vst.msk [vmem:[#allocation2] sm:$0x1] %vm32_vm13, %v3355_v14  ;;  %42 = vst.msk [vmem:[#allocation2 + $0x90] sm:$0x1] %vm32_vm13, %v3355_v14 }
  0x6d   :  { %3165 = vmatprep.mubr.msk.bf16.mxu1 %vm577_vm10, %v2839_v51  ;;  %43 = vst.msk [vmem:[#allocation2 + $0xa0] sm:$0x1] %vm32_vm13, %v3355_v14  ;;  %52 = vst.msk [vmem:[#allocation2 + $0x130] sm:$0x1] %vm32_vm13, %v3355_v14 }
  0x6e   :  { %53 = vst.msk [vmem:[#allocation2 + $0x9] sm:$0x1] %vm32_vm13, %v3355_v14  ;;  %62 = vst.msk [vmem:[#allocation2 + $0x99] sm:$0x1] %vm32_vm13, %v3355_v14 }
  0x6f   :  { %63 = vst.msk [vmem:[#allocation2 + $0xa9] sm:$0x1] %vm32_vm13, %v3355_v14  ;;  %72 = vst.msk [vmem:[#allocation2 + $0x139] sm:$0x1] %vm32_vm13, %v3355_v14 }
  0x71   :  { %3156 = vmatmul.mubr.msk.bf16.gmra.mxu0 %vm577_vm10, %v2983_v24 }
  0x74   :  { %3166 = vmatmul.mubr.msk.bf16.gmra.mxu1 %vm577_vm10, %v2840_v59 }
  0x75   :  { %3169 = vmatprep.mubr.msk.bf16.mxu1 %vm577_vm10, %v2841_v20  ;;  %v1262_v20 = vld [vmem:[%s4552_s2] sm:$0xf] }
  0x76   :  { %3342 = vmatprep.subr.msk.bf16.mxu1 %vm1313_vm11, %v1262_v20  ;;  %v1439_v27 = vsel %vm1313_vm11, %v1262_v20, 0 }
  0x77   :  { %3196 = vmatpush3.bf16.msra.mxu1 %v1439_v27 }
  0x78   :  { %3344 = vmatprep.subr.msk.bf16.mxu1 %vm1313_vm11, %v3861_v52 }
  0x7c   :  { %3170 = vmatmul.mubr.msk.bf16.gmra.mxu1 %vm577_vm10, %v2842_v5 }
  0x7d   :  { %3173 = vmatprep.mubr.msk.bf16.mxu1 %vm577_vm10, %v2843_v3 }
  0x84   :  { %3174 = vmatmul.mubr.msk.bf16.gmra.mxu1 %vm577_vm10, %v2844_v47 }
  0xdb   :  { %v3865_v62 = vpop.f32.mrf.mxu1 }
  0xdd   :  { %v3867_v2 = vpop.f32.mrf.mxu1 }
  0xdf   :  { %v3869_v55 = vpop.f32.mrf.mxu1 }
  0xe1   :  { %v3871_v9 = vpop.f32.mrf.mxu1 }
  0xef   :  { %v3109_v38 = vpop.f32.mrf.mxu0 }
  0xf1   :  { %v636_v58 = vpop.f32.mrf.mxu0 }
  0xf3   :  { %v3110_v39 = vpop.f32.mrf.mxu0 }
  0xf5   :  { %v639_v11 = vpop.f32.mrf.mxu0 }
 0x104   :  { %v3873_v57 = vpop.f32.mrf.mxu1 }
 0x106   :  { %v3875_v26 = vpop.f32.mrf.mxu1 }
 0x108   :  { %v3877_v5 = vpop.f32.mrf.mxu1 }
 0x10a   :  { %v3879_v41 = vpop.f32.mrf.mxu1 }
 0x10c   :  { %v3127_v10 = vpop.f32.mrf.mxu1 }
 0x10d   :  { %v780_v47 = vadd.f32 %v3127_v10, %v3109_v38 }
 0x10e   :  { %v771_v7 = vpop.f32.mrf.mxu1 }
 0x10f   :  { %v772_v32 = vadd.f32 %v771_v7, %v636_v58 }
 0x110   :  { %v3128_v13 = vpop.f32.mrf.mxu1 }
 0x111   :  { %v3113_v15 = vpop.f32.mrf.mxu0  ;;  %v783_v63 = vadd.f32 %v3128_v13, %v3110_v39 }
 0x112   :  { %v774_v25 = vpop.f32.mrf.mxu1 }
 0x113   :  { %v652_v18 = vpop.f32.mrf.mxu0  ;;  %v775_v37 = vadd.f32 %v774_v25, %v639_v11 }
 0x114   :  { %v3131_v22 = vpop.f32.mrf.mxu1 }
 0x115   :  { %v3114_v17 = vpop.f32.mrf.mxu0  ;;  %v796_v24 = vadd.f32 %v3131_v22, %v3113_v15 }
 0x116   :  { %v787_v28 = vpop.f32.mrf.mxu1 }
 0x117   :  { %v655_v29 = vpop.f32.mrf.mxu0  ;;  %v788_v3 = vadd.f32 %v787_v28, %v652_v18 }
 0x118   :  { %v3132_v30 = vpop.f32.mrf.mxu1 }
 0x119   :  { %v3145_v31 = vpop.f32.mrf.mxu0  ;;  %v799_v58 = vadd.f32 %v3132_v30, %v3114_v17 }
 0x11a   :  { %v790_v33 = vpop.f32.mrf.mxu1  ;;  %v978_v6 = vadd.f32 %v3145_v31, %v780_v47 }
 0x11b   :  { %v913_v34 = vpop.f32.mrf.mxu0  ;;  %v791_v15 = vadd.f32 %v790_v33, %v655_v29 }
 0x11c   :  { %v3135_v36 = vpop.f32.mrf.mxu1  ;;  %v976_v21 = vadd.f32 %v913_v34, %v772_v32 }
 0x11d   :  { %v3146_v49 = vpop.f32.mrf.mxu0  ;;  %v812_v17 = vadd.f32 %v3135_v36, %v3865_v62 }
 0x11e   :  { %v803_v43 = vpop.f32.mrf.mxu1  ;;  %v979_v4 = vadd.f32 %v3146_v49, %v783_v63 }
 0x11f   :  { %v916_v45 = vpop.f32.mrf.mxu0  ;;  %v804_v29 = vadd.f32 %v803_v43, %v3867_v2 }
 0x120   :  { %v3881_v40 = vpop.f32.mrf.mxu1  ;;  %v977_v12 = vadd.f32 %v916_v45, %v775_v37 }
 0x121   :  { %v3149_v35 = vpop.f32.mrf.mxu0  ;;  %v815_v62 = vadd.f32 %v3881_v40, %v3869_v55 }
 0x122   :  { %v3883_v61 = vpop.f32.mrf.mxu1  ;;  %v982_v10 = vadd.f32 %v3149_v35, %v796_v24 }
 0x123   :  { %v929_v60 = vpop.f32.mrf.mxu0 }
 0x124   :  { %v3885_v8 = vpop.f32.mrf.mxu1  ;;  %v980_v22 = vadd.f32 %v929_v60, %v788_v3 }
 0x125   :  { %v3150_v42 = vpop.f32.mrf.mxu0 }
 0x126   :  { %v3887_v44 = vpop.f32.mrf.mxu1  ;;  %v983_v49 = vadd.f32 %v3150_v42, %v799_v58  ;;  %v1263_v42 = vld [vmem:[#allocation2 + $0x1] sm:$0xff] }
 0x127   :  { %v932_v48 = vpop.f32.mrf.mxu0  ;;  %v820_v58 = vadd.f32 %v3887_v44, %v3875_v26 }
 0x128   :  { %v3889_v23 = vpop.f32.mrf.mxu1  ;;  %v981_v60 = vadd.f32 %v932_v48, %v791_v15  ;;  %v1238_v48 = vld [vmem:[#allocation2] sm:$0xff] }
 0x129   :  { %v3153_v56 = vpop.f32.mrf.mxu0 }
 0x12a   :  { %v3891_v50 = vpop.f32.mrf.mxu1 }
 0x12b   :  { %v945_v46 = vpop.f32.mrf.mxu0 }
 0x12c   :  { %v3163_v53 = vpop.f32.mrf.mxu1 }
 0x12d   :  { %v1168_v51 = vadd.f32 %v3163_v53, %v978_v6  ;;  %v3154_v14 = vpop.f32.mrf.mxu0 }
 0x12e   :  { %v1103_v1 = vpop.f32.mrf.mxu1 }
 0x12f   :  { %v1191_v0 = vadd.f32 %v3896_v19, %v1168_v51  ;;  %v1166_v59 = vadd.f32 %v1103_v1, %v976_v21  ;;  %v948_v18 = vpop.f32.mrf.mxu0  ;;  %v986_v21 = vadd.f32 %v3153_v56, %v812_v17  ;;  %v984_v51 = vadd.f32 %v945_v46, %v804_v29 }
 0x130   :  { %v3164_v54 = vpop.f32.mrf.mxu1  ;;  %v807_v1 = vadd.f32 %v3883_v61, %v3871_v9  ;;  %v828_v46 = vadd.f32 %v3885_v8, %v3873_v57  ;;  %v987_v61 = vadd.f32 %v3154_v14, %v815_v62 }
 0x131   :  { %v1207_v20 = vmax.f32 %v1191_v0, 0.0  ;;  %v1189_v27 = vadd.f32 %v3896_v19, %v1166_v59  ;;  %v1169_v38 = vadd.f32 %v3164_v54, %v979_v4  ;;  %v3157_v32 = vpop.f32.mrf.mxu0 }
 0x132   :  { %v1106_v39 = vpop.f32.mrf.mxu1 }
 0x133   :  { %1224 = vst.msk [vmem:[#allocation2 + $0x31] sm:$0xff] %vm21_vm12, %v1207_v20  ;;  %v1205_v11 = vmax.f32 %v1189_v27, 0.0  ;;  %v1192_v7 = vadd.f32 %v3896_v19, %v1169_v38  ;;  %v1167_v13 = vadd.f32 %v1106_v39, %v977_v12  ;;  %v961_v55 = vpop.f32.mrf.mxu0  ;;  %v985_v38 = vadd.f32 %v948_v18, %v807_v1 }
 0x134   :  { %v3167_v25 = vpop.f32.mrf.mxu1  ;;  %v1755_v18 = vsel %vm1313_vm11, %v3861_v52, 0  ;;  %v988_v52 = vadd.f32 %v961_v55, %v820_v58 }
 0x135   :  { %1222 = vst.msk [vmem:[#allocation2 + $0x11] sm:$0xff] %vm21_vm12, %v1205_v11  ;;  %v1208_v28 = vmax.f32 %v1192_v7, 0.0  ;;  %v1190_v31 = vadd.f32 %v3896_v19, %v1167_v13  ;;  %v1172_v34 = vadd.f32 %v3167_v25, %v982_v10  ;;  %v1589_v10 = vsel %vm1313_vm11, %v3854_v16, 0  ;;  %v3158_v11 = vpop.f32.mrf.mxu0 }
 0x136   :  { %v1119_v30 = vpop.f32.mrf.mxu1  ;;  %v831_v25 = vadd.f32 %v3889_v23, %v3877_v5  ;;  %v3968_v23 = vld [vmem:[%s4552_s2 + $0x14] sm:$0xf] }
 0x137   :  { %1225 = vst.msk [vmem:[#allocation2 + $0x41] sm:$0xff] %vm21_vm12, %v1208_v28  ;;  %v1206_v45 = vmax.f32 %v1190_v31, 0.0  ;;  %v1195_v35 = vadd.f32 %v3896_v19, %v1172_v34  ;;  %v1170_v47 = vadd.f32 %v1119_v30, %v980_v22  ;;  %v3959_v28 = vld [vmem:[%s4552_s2 + $0x10] sm:$0xf]  ;;  %v990_v31 = vadd.f32 %v3157_v32, %v828_v46  ;;  %v964_v29 = vpop.f32.mrf.mxu0  ;;  %v1246_v46 = vld [vmem:[#allocation2 + $0xa0] sm:$0xff] }
 0x138   :  { %v3168_v33 = vpop.f32.mrf.mxu1  ;;  %v823_v30 = vadd.f32 %v3891_v50, %v3879_v41 }
 0x139   :  { %1223 = vst.msk [vmem:[#allocation2 + $0x21] sm:$0xff] %vm21_vm12, %v1206_v45  ;;  %v1211_v6 = vmax.f32 %v1195_v35, 0.0  ;;  %v1193_v63 = vadd.f32 %v3896_v19, %v1170_v47  ;;  %v1173_v53 = vadd.f32 %v3168_v33, %v983_v49 }
 0x13a   :  { %v1122_v36 = vpop.f32.mrf.mxu1  ;;  %v3934_v8 = vld [vmem:[#allocation2 + $0x31] sm:$0xff] }
 0x13b   :  { %1228 = vst.msk [vmem:[#allocation2 + $0x71] sm:$0xff] %vm21_vm12, %v1211_v6  ;;  %v1209_v37 = vmax.f32 %v1193_v63, 0.0  ;;  %v1196_v2 = vadd.f32 %v3896_v19, %v1173_v53  ;;  %v1171_v43 = vadd.f32 %v1122_v36, %v981_v60  ;;  %v3946_v44 = vld [vmem:[#allocation2 + $0x30] sm:$0xff]  ;;  %v991_v53 = vadd.f32 %v3158_v11, %v831_v25 }
 0x13c   :  { %v3171_v4 = vpop.f32.mrf.mxu1  ;;  %v3916_v24 = vld [vmem:[#allocation2 + $0x11] sm:$0xff] }
 0x13d   :  { %v3918_v0 = vld [vmem:[#allocation2 + $0x10] sm:$0xff]  ;;  %1226 = vst.msk [vmem:[#allocation2 + $0x51] sm:$0xff] %vm21_vm12, %v1209_v37  ;;  %v1212_v40 = vmax.f32 %v1196_v2, 0.0  ;;  %v1194_v56 = vadd.f32 %v3896_v19, %v1171_v43  ;;  %v1176_v59 = vadd.f32 %v3171_v4, %v986_v21  ;;  %v1279_v3 = vpack.c.bf16 %v3916_v24, %v1263_v42 }
 0x13e   :  { %v1135_v54 = vpop.f32.mrf.mxu1  ;;  %v1254_v9 = vpack.c.bf16 %v3918_v0, %v1238_v48  ;;  %v3974_v45 = vld [vmem:[#allocation2 + $0x41] sm:$0xff]  ;;  %v989_v21 = vadd.f32 %v964_v29, %v823_v30 }
 0x13f   :  { %1229 = vst.msk [vmem:[#allocation2 + $0x81] sm:$0xff] %vm21_vm12, %v1212_v40  ;;  %v1210_v12 = vmax.f32 %v1194_v56, 0.0  ;;  %v1199_v20 = vadd.f32 %v3896_v19, %v1176_v59  ;;  %v1174_v27 = vadd.f32 %v1135_v54, %v984_v51  ;;  %3179 = vmatprep.mubr.msk.bf16.mxu0 %vm21_vm12, %v1279_v3  ;;  %v3986_v50 = vld [vmem:[#allocation2 + $0x40] sm:$0xff] }
 0x140   :  { %3197 = vmatprep.mubr.msk.bf16.mxu1 %vm21_vm12, %v1254_v9  ;;  %v3172_v39 = vpop.f32.mrf.mxu1  ;;  %v3932_v57 = vld [vmem:[#allocation2 + $0x21] sm:$0xff] }
 0x141   :  { %v3936_v14 = vld [vmem:[#allocation2 + $0x20] sm:$0xff]  ;;  %1227 = vst.msk [vmem:[#allocation2 + $0x61] sm:$0xff] %vm21_vm12, %v1210_v12  ;;  %v1215_v7 = vmax.f32 %v1199_v20, 0.0  ;;  %v1197_v13 = vadd.f32 %v3896_v19, %v1174_v27  ;;  %v1177_v15 = vadd.f32 %v3172_v39, %v987_v61  ;;  %v3944_v26 = vpack.c.bf16 %v3934_v8, %v3932_v57 }
 0x142   :  { %v1138_v22 = vpop.f32.mrf.mxu1  ;;  %v3952_v16 = vpack.c.bf16 %v3946_v44, %v3936_v14  ;;  %v4004_v43 = vld [vmem:[#allocation2 + $0x71] sm:$0xff]  ;;  %v1271_v3 = vld [vmem:[#allocation2 + $0xa1] sm:$0xff] }
 0x143   :  { %1232 = vst.msk [vmem:[#allocation2 + $0xd1] sm:$0xff] %vm21_vm12, %v1215_v7  ;;  %v1213_v34 = vmax.f32 %v1197_v13, 0.0  ;;  %v1200_v17 = vadd.f32 %v3896_v19, %v1177_v15  ;;  %v1175_v5 = vadd.f32 %v1138_v22, %v985_v38  ;;  %3180 = vmatmul.mubr.msk.bf16.vlgmr.msra.gmra.mxu0 %vm21_vm12, %v3944_v26  ;;  %v4014_v40 = vld [vmem:[#allocation2 + $0x70] sm:$0xff]  ;;  %v1538_v30 = vld [vmem:[#allocation2 + $0x2] sm:$0xff] }
 0x144   :  { %3198 = vmatmul.mubr.msk.bf16.vlgmr.msra.gmra.mxu1 %vm21_vm12, %v3952_v16  ;;  %3214 = vmatpush3.bf16.msra.mxu0 %v1589_v10  ;;  %v3175_v49 = vpop.f32.mrf.mxu1  ;;  %v3976_v35 = vld [vmem:[#allocation2 + $0x51] sm:$0xff] }
 0x145   :  { %v3978_v47 = vld [vmem:[#allocation2 + $0x50] sm:$0xff]  ;;  %1230 = vst.msk [vmem:[#allocation2 + $0xb1] sm:$0xff] %vm21_vm12, %v1213_v34  ;;  %v1216_v33 = vmax.f32 %v1200_v17, 0.0  ;;  %v1198_v60 = vadd.f32 %v3896_v19, %v1175_v5  ;;  %v1180_v32 = vadd.f32 %v3175_v49, %v990_v31  ;;  %v3984_v41 = vpack.c.bf16 %v3976_v35, %v3974_v45  ;;  %3232 = vmatpush3.bf16.msra.mxu1 %v1755_v18 }
 0x146   :  { %3345 = vmatprep.subr.msk.bf16.mxu0 %vm1313_vm11, %v3959_v28  ;;  %v1151_v6 = vpop.f32.mrf.mxu1  ;;  %v3992_v63 = vpack.c.bf16 %v3978_v47, %v3986_v50  ;;  %3346 = vmatprep.subr.msk.bf16.mxu1 %vm1313_vm11, %v3968_v23  ;;  %v4077_v49 = vld [vmem:[#allocation2 + $0x12] sm:$0xff] }
 0x147   :  { %1233 = vst.msk [vmem:[#allocation2 + $0xe1] sm:$0xff] %vm21_vm12, %v1216_v33  ;;  %v1214_v62 = vmax.f32 %v1198_v60, 0.0  ;;  %v1203_v36 = vadd.f32 %v3896_v19, %v1180_v32  ;;  %v1178_v42 = vadd.f32 %v1151_v6, %v988_v52  ;;  %3183 = vmatprep.mubr.msk.bf16.mxu0 %vm21_vm12, %v3984_v41 }
 0x148   :  { %3201 = vmatprep.mubr.msk.bf16.mxu1 %vm21_vm12, %v3992_v63  ;;  %v3176_v37 = vpop.f32.mrf.mxu1  ;;  %v4002_v2 = vld [vmem:[#allocation2 + $0x61] sm:$0xff] }
 0x149   :  { %v4006_v48 = vld [vmem:[#allocation2 + $0x60] sm:$0xff]  ;;  %1231 = vst.msk [vmem:[#allocation2 + $0xc1] sm:$0xff] %vm21_vm12, %v1214_v62  ;;  %v1219_v51 = vmax.f32 %v1203_v36, 0.0  ;;  %v1201_v1 = vadd.f32 %v3896_v19, %v1178_v42  ;;  %v1181_v4 = vadd.f32 %v3176_v37, %v991_v53  ;;  %v4012_v55 = vpack.c.bf16 %v4004_v43, %v4002_v2  ;;  %v4099_v42 = vld [vmem:[#allocation2 + $0x32] sm:$0xff] }
 0x14a   :  { %v1154_v56 = vpop.f32.mrf.mxu1  ;;  %v4018_v59 = vpack.c.bf16 %v4014_v40, %v4006_v48  ;;  %v4037_v11 = vld [vmem:[#allocation2 + $0xd1] sm:$0xff]  ;;  %v1554_v53 = vpack.c.bf16 %v4077_v49, %v1538_v30  ;;  %v1720_v62 = vpack.c.bf16 %v3936_v14, %v3918_v0  ;;  %v1540_v36 = vld [vmem:[#allocation2 + $0x22] sm:$0xff]  ;;  %v1721_v0 = vpack.c.bf16 %v3986_v50, %v3946_v44  ;;  %v2917_v44 = vld [vmem:[%s4552_s2 + $0x1c] sm:$0xf] }
 0x14b   :  { %1236 = vst.msk [vmem:[#allocation2 + $0x111] sm:$0xff] %vm21_vm12, %v1219_v51  ;;  %v1217_v54 = vmax.f32 %v1201_v1, 0.0  ;;  %v1204_v9 = vadd.f32 %v3896_v19, %v1181_v4  ;;  %v1179_v61 = vadd.f32 %v1154_v56, %v989_v21  ;;  %3184 = vmatmul.mubr.msk.bf16.gmra.mxu0 %vm21_vm12, %v4012_v55  ;;  %v4041_v15 = vld [vmem:[#allocation2 + $0xd0] sm:$0xff]  ;;  %v4104_v37 = vpack.c.bf16 %v4099_v42, %v1540_v36  ;;  %v1542_v14 = vld [vmem:[#allocation2 + $0x42] sm:$0xff] }
 0x14c   :  { %3202 = vmatmul.mubr.msk.bf16.gmra.mxu1 %vm21_vm12, %v4018_v59  ;;  %v4026_v12 = vld [vmem:[#allocation2 + $0xb1] sm:$0xff]  ;;  %v1921_v51 = vsel %vm1313_vm11, %v3959_v28, 0  ;;  %v1722_v4 = vpack.c.bf16 %v4006_v48, %v3978_v47  ;;  %v2087_v56 = vsel %vm1313_vm11, %v3968_v23, 0  ;;  %v1544_v47 = vld [vmem:[#allocation2 + $0x62] sm:$0xff] }
 0x14d   :  { %v4028_v20 = vld [vmem:[#allocation2 + $0xb0] sm:$0xff]  ;;  %1234 = vst.msk [vmem:[#allocation2 + $0xf1] sm:$0xff] %vm21_vm12, %v1217_v54  ;;  %v1220_v27 = vmax.f32 %v1204_v9, 0.0  ;;  %v1202_v38 = vadd.f32 %v3896_v19, %v1179_v61  ;;  %v1283_v58 = vpack.c.bf16 %v4026_v12, %v1271_v3  ;;  %v2908_v28 = vld [vmem:[%s4552_s2 + $0x18] sm:$0xf]  ;;  %v4130_v23 = vld [vmem:[#allocation2 + $0x80] sm:$0xff] }
 0x14e   :  { %v1258_v39 = vpack.c.bf16 %v4028_v20, %v1246_v46  ;;  %v4053_v22 = vld [vmem:[#allocation2 + $0xe1] sm:$0xff]  ;;  %v4101_v21 = vld [vmem:[#allocation2 + $0x52] sm:$0xff]  ;;  %v1723_v54 = vpack.c.bf16 %v4130_v23, %v4014_v40 }
 0x14f   :  { %1237 = vst.msk [vmem:[#allocation2 + $0x121] sm:$0xff] %vm21_vm12, %v1220_v27  ;;  %v1218_v10 = vmax.f32 %v1202_v38, 0.0  ;;  %3187 = vmatprep.mubr.msk.bf16.mxu0 %vm21_vm12, %v1283_v58  ;;  %v4059_v31 = vld [vmem:[#allocation2 + $0xe0] sm:$0xff]  ;;  %v4113_v1 = vpack.c.bf16 %v4101_v21, %v1542_v14  ;;  %v1547_v48 = vld [vmem:[#allocation2 + $0xb2] sm:$0xff] }
 0x150   :  { %3205 = vmatprep.mubr.msk.bf16.mxu1 %vm21_vm12, %v1258_v39  ;;  %v4039_v7 = vld [vmem:[#allocation2 + $0xc1] sm:$0xff]  ;;  %v1545_v3 = vld [vmem:[#allocation2 + $0x72] sm:$0xff]  ;;  %v1725_v40 = vpack.c.bf16 %v4059_v31, %v4041_v15 }
 0x151   :  { %v1248_v13 = vld [vmem:[#allocation2 + $0xc0] sm:$0xff]  ;;  %1235 = vst.msk [vmem:[#allocation2 + $0x101] sm:$0xff] %vm21_vm12, %v1218_v10  ;;  %v4046_v19 = vpack.c.bf16 %v4037_v11, %v4039_v7  ;;  %v4133_v46 = vpack.c.bf16 %v1545_v3, %v1544_v47  ;;  %v1549_v58 = vld [vmem:[#allocation2 + $0xd2] sm:$0xff] }
 0x152   :  { %v4049_v25 = vpack.c.bf16 %v4041_v15, %v1248_v13  ;;  %v4075_v52 = vld [vmem:[#allocation2 + $0x111] sm:$0xff]  ;;  %v1546_v50 = vld [vmem:[#allocation2 + $0xa2] sm:$0xff]  ;;  %v1724_v61 = vpack.c.bf16 %v1248_v13, %v4028_v20 }
 0x153   :  { %3188 = vmatmul.mubr.msk.bf16.gmra.mxu0 %vm21_vm12, %v4046_v19  ;;  %v4081_v60 = vld [vmem:[#allocation2 + $0x110] sm:$0xff]  ;;  %v1558_v9 = vpack.c.bf16 %v1547_v48, %v1546_v50  ;;  %v1548_v27 = vld [vmem:[#allocation2 + $0xc2] sm:$0xff] }
 0x154   :  { %3206 = vmatmul.mubr.msk.bf16.gmra.mxu1 %vm21_vm12, %v4049_v25  ;;  %v4057_v18 = vld [vmem:[#allocation2 + $0xf1] sm:$0xff]  ;;  %v4143_v39 = vpack.c.bf16 %v1549_v58, %v1548_v27  ;;  %v1550_v10 = vld [vmem:[#allocation2 + $0xe2] sm:$0xff] }
 0x155   :  { %v4061_v34 = vld [vmem:[#allocation2 + $0xf0] sm:$0xff]  ;;  %v4065_v17 = vpack.c.bf16 %v4057_v18, %v4053_v22 }
 0x156   :  { %v4069_v5 = vpack.c.bf16 %v4061_v34, %v4059_v31  ;;  %v1551_v38 = vld [vmem:[#allocation2 + $0xf2] sm:$0xff]  ;;  %v1886_v31 = vpack.c.bf16 %v3932_v57, %v3916_v24  ;;  %v1888_v24 = vpack.c.bf16 %v4002_v2, %v3976_v35  ;;  %v2054_v57 = vpack.c.bf16 %v1544_v47, %v4101_v21 }
 0x157   :  { %3191 = vmatprep.mubr.msk.bf16.mxu0 %vm21_vm12, %v4065_v17  ;;  %v4147_v30 = vpack.c.bf16 %v1551_v38, %v1550_v10  ;;  %v2056_v21 = vpack.c.bf16 %v1548_v27, %v1547_v48 }
 0x158   :  { %3209 = vmatprep.mubr.msk.bf16.mxu1 %vm21_vm12, %v4069_v5  ;;  %v4079_v29 = vld [vmem:[#allocation2 + $0x101] sm:$0xff] }
 0x159   :  { %v1252_v33 = vld [vmem:[#allocation2 + $0x100] sm:$0xff]  ;;  %v4085_v32 = vpack.c.bf16 %v4075_v52, %v4079_v29 }
 0x15a   :  { %v4088_v6 = vpack.c.bf16 %v4081_v60, %v1252_v33  ;;  %v1726_v20 = vpack.c.bf16 %v1252_v33, %v4061_v34  ;;  %v1552_v13 = vld [vmem:[#allocation2 + $0x102] sm:$0xff]  ;;  %v2052_v34 = vpack.c.bf16 %v1540_v36, %v4077_v49  ;;  %v1887_v33 = vpack.c.bf16 %v3974_v45, %v3934_v8 }
 0x15b   :  { %3192 = vmatmul.mubr.msk.bf16.gmra.mxu0 %vm21_vm12, %v4085_v32  ;;  %v2420_v49 = vsel %vm1313_vm11, %v2917_v44, 0  ;;  %v2926_v36 = vld [vmem:[%s4552_s2 + $0x20] sm:$0xf] }
 0x15c   :  { %3210 = vmatmul.mubr.msk.bf16.gmra.mxu1 %vm21_vm12, %v4088_v6  ;;  %3215 = vmatprep.mubr.msk.bf16.mxu0 %vm21_vm12, %v1554_v53  ;;  %v4156_v53 = vld [vmem:[#allocation2 + $0x120] sm:$0xff] }
 0x15d   :  { %3233 = vmatprep.mubr.msk.bf16.mxu1 %vm21_vm12, %v1720_v62  ;;  %v1553_v62 = vld [vmem:[#allocation2 + $0x112] sm:$0xff]  ;;  %v1727_v15 = vpack.c.bf16 %v4156_v53, %v4081_v60  ;;  %v2053_v60 = vpack.c.bf16 %v1542_v14, %v4099_v42  ;;  %v1877_v8 = vld [vmem:[#allocation2 + $0x81] sm:$0xff]  ;;  %v1890_v42 = vpack.c.bf16 %v4039_v7, %v4026_v12  ;;  %v1891_v14 = vpack.c.bf16 %v4053_v22, %v4037_v11 }
 0x15e   :  { %v2043_v45 = vld [vmem:[#allocation2 + $0x82] sm:$0xff]  ;;  %v1889_v35 = vpack.c.bf16 %v1877_v8, %v4004_v43  ;;  %v1892_v43 = vpack.c.bf16 %v4079_v29, %v4057_v18  ;;  %v2586_v11 = vsel %vm1313_vm11, %v2926_v36, 0  ;;  %v2210_v22 = vld [vmem:[#allocation2 + $0x90] sm:$0xff] }
 0x15f   :  { %v2055_v2 = vpack.c.bf16 %v2043_v45, %v1545_v3  ;;  %v1885_v12 = vld [vmem:[#allocation2 + $0x121] sm:$0xff]  ;;  %v2222_v18 = vpack.c.bf16 %v2210_v22, %v4130_v23 }
 0x160   :  { %v2051_v7 = vld [vmem:[#allocation2 + $0x122] sm:$0xff] }
 0x163   :  { %3216 = vmatmul.mubr.msk.bf16.vlgmr.msra.gmra.mxu0 %vm21_vm12, %v4104_v37 }
 0x164   :  { %3234 = vmatmul.mubr.msk.bf16.vlgmr.msra.gmra.mxu1 %vm21_vm12, %v1721_v0  ;;  %3250 = vmatpush3.bf16.msra.mxu0 %v1921_v51  ;;  %v4158_v51 = vpack.c.bf16 %v1553_v62, %v1552_v13  ;;  %v2254_v0 = vsel %vm1313_vm11, %v2908_v28, 0 }
 0x165   :  { %3219 = vmatprep.mubr.msk.bf16.mxu0 %vm21_vm12, %v4113_v1  ;;  %3237 = vmatprep.mubr.msk.bf16.mxu1 %vm21_vm12, %v1722_v4  ;;  %v2057_v4 = vpack.c.bf16 %v1550_v10, %v1549_v58 }
 0x166   :  { %3268 = vmatpush3.bf16.msra.mxu1 %v2087_v56  ;;  %3347 = vmatprep.subr.msk.bf16.mxu0 %vm1313_vm11, %v2908_v28  ;;  %v2058_v56 = vpack.c.bf16 %v1552_v13, %v1551_v38  ;;  %v1893_v28 = vpack.c.bf16 %v1885_v12, %v4075_v52 }
 0x167   :  { %3348 = vmatprep.subr.msk.bf16.mxu1 %vm1313_vm11, %v2917_v44  ;;  %v2059_v44 = vpack.c.bf16 %v2051_v7, %v1553_v62 }
 0x16b   :  { %3220 = vmatmul.mubr.msk.bf16.gmra.mxu0 %vm21_vm12, %v4133_v46 }
 0x16c   :  { %3238 = vmatmul.mubr.msk.bf16.gmra.mxu1 %vm21_vm12, %v1723_v54  ;;  %3223 = vmatprep.mubr.msk.bf16.mxu0 %vm21_vm12, %v1558_v9 }
 0x16d   :  { %3241 = vmatprep.mubr.msk.bf16.mxu1 %vm21_vm12, %v1724_v61 }
 0x173   :  { %3224 = vmatmul.mubr.msk.bf16.gmra.mxu0 %vm21_vm12, %v4143_v39 }
 0x174   :  { %3242 = vmatmul.mubr.msk.bf16.gmra.mxu1 %vm21_vm12, %v1725_v40  ;;  %3227 = vmatprep.mubr.msk.bf16.mxu0 %vm21_vm12, %v4147_v30 }
 0x175   :  { %3245 = vmatprep.mubr.msk.bf16.mxu1 %vm21_vm12, %v1726_v20 }
 0x17b   :  { %3228 = vmatmul.mubr.msk.bf16.gmra.mxu0 %vm21_vm12, %v4158_v51 }
 0x17c   :  { %3246 = vmatmul.mubr.msk.bf16.gmra.mxu1 %vm21_vm12, %v1727_v15  ;;  %3251 = vmatprep.mubr.msk.bf16.mxu0 %vm21_vm12, %v1886_v31 }
 0x17d   :  { %3269 = vmatprep.mubr.msk.bf16.mxu1 %vm21_vm12, %v2052_v34 }
 0x183   :  { %3252 = vmatmul.mubr.msk.bf16.vlgmr.msra.gmra.mxu0 %vm21_vm12, %v1887_v33 }
 0x184   :  { %3270 = vmatmul.mubr.msk.bf16.vlgmr.msra.gmra.mxu1 %vm21_vm12, %v2053_v60  ;;  %3286 = vmatpush3.bf16.msra.mxu0 %v2254_v0 }
 0x185   :  { %3255 = vmatprep.mubr.msk.bf16.mxu0 %vm21_vm12, %v1888_v24  ;;  %3273 = vmatprep.mubr.msk.bf16.mxu1 %vm21_vm12, %v2054_v57 }
 0x186   :  { %3304 = vmatpush3.bf16.msra.mxu1 %v2420_v49  ;;  %3349 = vmatprep.subr.msk.bf16.mxu0 %vm1313_vm11, %v2926_v36 }
 0x18b   :  { %3256 = vmatmul.mubr.msk.bf16.gmra.mxu0 %vm21_vm12, %v1889_v35 }
 0x18c   :  { %3274 = vmatmul.mubr.msk.bf16.gmra.mxu1 %vm21_vm12, %v2055_v2  ;;  %3259 = vmatprep.mubr.msk.bf16.mxu0 %vm21_vm12, %v1890_v42 }
 0x18d   :  { %3277 = vmatprep.mubr.msk.bf16.mxu1 %vm21_vm12, %v2056_v21 }
 0x193   :  { %3260 = vmatmul.mubr.msk.bf16.gmra.mxu0 %vm21_vm12, %v1891_v14 }
 0x194   :  { %3278 = vmatmul.mubr.msk.bf16.gmra.mxu1 %vm21_vm12, %v2057_v4  ;;  %3263 = vmatprep.mubr.msk.bf16.mxu0 %vm21_vm12, %v1892_v43 }
 0x195   :  { %3281 = vmatprep.mubr.msk.bf16.mxu1 %vm21_vm12, %v2058_v56 }
 0x19b   :  { %3264 = vmatmul.mubr.msk.bf16.gmra.mxu0 %vm21_vm12, %v1893_v28 }
 0x19c   :  { %3282 = vmatmul.mubr.msk.bf16.gmra.mxu1 %vm21_vm12, %v2059_v44  ;;  %3287 = vmatprep.mubr.msk.bf16.mxu0 %vm21_vm12, %v3952_v16  ;;  %v2376_v16 = vld [vmem:[#allocation2 + $0x91] sm:$0xff] }
 0x19d   :  { %3305 = vmatprep.mubr.msk.bf16.mxu1 %vm21_vm12, %v3944_v26  ;;  %v2388_v26 = vpack.c.bf16 %v2376_v16, %v1877_v8 }
 0x1a3   :  { %3288 = vmatmul.mubr.msk.bf16.vlgmr.msra.gmra.mxu0 %vm21_vm12, %v3992_v63  ;;  %v2384_v63 = vld [vmem:[#allocation2 + $0x131] sm:$0xff] }
 0x1a4   :  { %3306 = vmatmul.mubr.msk.bf16.vlgmr.msra.gmra.mxu1 %vm21_vm12, %v3984_v41  ;;  %3322 = vmatpush3.bf16.msra.mxu0 %v2586_v11  ;;  %v2218_v41 = vld [vmem:[#allocation2 + $0x130] sm:$0xff] }
 0x1a5   :  { %3291 = vmatprep.mubr.msk.bf16.mxu0 %vm21_vm12, %v4018_v59  ;;  %3309 = vmatprep.mubr.msk.bf16.mxu1 %vm21_vm12, %v4012_v55  ;;  %v2226_v55 = vpack.c.bf16 %v2218_v41, %v4156_v53  ;;  %v2392_v59 = vpack.c.bf16 %v2384_v63, %v1885_v12 }
 0x1ab   :  { %3292 = vmatmul.mubr.msk.bf16.gmra.mxu0 %vm21_vm12, %v2222_v18 }
 0x1ac   :  { %3310 = vmatmul.mubr.msk.bf16.gmra.mxu1 %vm21_vm12, %v2388_v26  ;;  %3295 = vmatprep.mubr.msk.bf16.mxu0 %vm21_vm12, %v4049_v25 }
 0x1ad   :  { %3313 = vmatprep.mubr.msk.bf16.mxu1 %vm21_vm12, %v4046_v19  ;;  %v2542_v19 = vld [vmem:[#allocation2 + $0x92] sm:$0xff] }
 0x1ae   :  { %v2554_v25 = vpack.c.bf16 %v2542_v19, %v2043_v45 }
 0x1b3   :  { %3296 = vmatmul.mubr.msk.bf16.gmra.mxu0 %vm21_vm12, %v4069_v5 }
 0x1b4   :  { %3314 = vmatmul.mubr.msk.bf16.gmra.mxu1 %vm21_vm12, %v4065_v17  ;;  %3299 = vmatprep.mubr.msk.bf16.mxu0 %vm21_vm12, %v4088_v6  ;;  %v2550_v17 = vld [vmem:[#allocation2 + $0x132] sm:$0xff] }
 0x1b5   :  { %3317 = vmatprep.mubr.msk.bf16.mxu1 %vm21_vm12, %v4085_v32  ;;  %v2558_v5 = vpack.c.bf16 %v2550_v17, %v2051_v7 }
 0x1bb   :  { %3300 = vmatmul.mubr.msk.bf16.gmra.mxu0 %vm21_vm12, %v2226_v55 }
 0x1bc   :  { %3318 = vmatmul.mubr.msk.bf16.gmra.mxu1 %vm21_vm12, %v2392_v59  ;;  %3323 = vmatprep.mubr.msk.bf16.mxu0 %vm21_vm12, %v4104_v37 }
 0x1c3   :  { %3324 = vmatmul.mubr.msk.bf16.vlgmr.msra.gmra.mxu0 %vm21_vm12, %v4113_v1 }
 0x1c4   :  { %3327 = vmatprep.mubr.msk.bf16.mxu0 %vm21_vm12, %v4133_v46 }
 0x1cb   :  { %3328 = vmatmul.mubr.msk.bf16.gmra.mxu0 %vm21_vm12, %v2554_v25 }
 0x1cc   :  { %3331 = vmatprep.mubr.msk.bf16.mxu0 %vm21_vm12, %v4143_v39 }
 0x1d3   :  { %3332 = vmatmul.mubr.msk.bf16.gmra.mxu0 %vm21_vm12, %v4147_v30 }
 0x1d4   :  { %3335 = vmatprep.mubr.msk.bf16.mxu0 %vm21_vm12, %v4158_v51 }
 0x1db   :  { %3336 = vmatmul.mubr.msk.bf16.gmra.mxu0 %vm21_vm12, %v2558_v5 }
 0x203   :  { %v3181_v52 = vpop.f32.mrf.mxu0 }
 0x204   :  { %v3199_v29 = vpop.f32.mrf.mxu1 }
 0x205   :  { %v1484_v32 = vadd.f32 %v3199_v29, %v3181_v52  ;;  %v1351_v6 = vpop.f32.mrf.mxu0 }
 0x206   :  { %v1475_v37 = vpop.f32.mrf.mxu1 }
 0x207   :  { %v1476_v1 = vadd.f32 %v1475_v37, %v1351_v6  ;;  %v3182_v47 = vpop.f32.mrf.mxu0 }
 0x208   :  { %v3200_v23 = vpop.f32.mrf.mxu1 }
 0x209   :  { %v1487_v50 = vadd.f32 %v3200_v23, %v3182_v47  ;;  %v1354_v48 = vpop.f32.mrf.mxu0 }
 0x20a   :  { %v1478_v3 = vpop.f32.mrf.mxu1 }
 0x20b   :  { %v1479_v46 = vadd.f32 %v1478_v3, %v1354_v48  ;;  %v3185_v54 = vpop.f32.mrf.mxu0 }
 0x20c   :  { %v3203_v9 = vpop.f32.mrf.mxu1 }
 0x20d   :  { %v1500_v61 = vadd.f32 %v3203_v9, %v3185_v54  ;;  %v1367_v27 = vpop.f32.mrf.mxu0 }
 0x20e   :  { %v1491_v38 = vpop.f32.mrf.mxu1 }
 0x20f   :  { %v1492_v58 = vadd.f32 %v1491_v38, %v1367_v27  ;;  %v3186_v39 = vpop.f32.mrf.mxu0 }
 0x210   :  { %v3204_v10 = vpop.f32.mrf.mxu1 }
 0x211   :  { %v1503_v40 = vadd.f32 %v3204_v10, %v3186_v39  ;;  %v1370_v30 = vpop.f32.mrf.mxu0 }
 0x212   :  { %v1494_v20 = vpop.f32.mrf.mxu1 }
 0x213   :  { %v1495_v13 = vadd.f32 %v1494_v20, %v1370_v30  ;;  %v3189_v53 = vpop.f32.mrf.mxu0 }
 0x214   :  { %v3207_v62 = vpop.f32.mrf.mxu1 }
 0x215   :  { %v1516_v51 = vadd.f32 %v3207_v62, %v3189_v53  ;;  %v1383_v15 = vpop.f32.mrf.mxu0 }
 0x216   :  { %v1507_v31 = vpop.f32.mrf.mxu1 }
 0x217   :  { %v1508_v34 = vadd.f32 %v1507_v31, %v1383_v15  ;;  %v3190_v33 = vpop.f32.mrf.mxu0 }
 0x218   :  { %v3208_v0 = vpop.f32.mrf.mxu1 }
 0x219   :  { %v1519_v60 = vadd.f32 %v3208_v0, %v3190_v33  ;;  %v1386_v24 = vpop.f32.mrf.mxu0 }
 0x21a   :  { %v1510_v57 = vpop.f32.mrf.mxu1 }
 0x21b   :  { %v1511_v49 = vadd.f32 %v1510_v57, %v1386_v24  ;;  %v3193_v36 = vpop.f32.mrf.mxu0 }
 0x21c   :  { %v3211_v8 = vpop.f32.mrf.mxu1 }
 0x21d   :  { %v1532_v45 = vadd.f32 %v3211_v8, %v3193_v36  ;;  %v1399_v35 = vpop.f32.mrf.mxu0 }
 0x21e   :  { %v1523_v2 = vpop.f32.mrf.mxu1 }
 0x21f   :  { %v1524_v42 = vadd.f32 %v1523_v2, %v1399_v35  ;;  %v3194_v21 = vpop.f32.mrf.mxu0 }
 0x220   :  { %v3212_v14 = vpop.f32.mrf.mxu1 }
 0x221   :  { %v1535_v4 = vadd.f32 %v3212_v14, %v3194_v21  ;;  %v1402_v43 = vpop.f32.mrf.mxu0 }
 0x222   :  { %v1526_v56 = vpop.f32.mrf.mxu1 }
 0x223   :  { %v1527_v12 = vadd.f32 %v1526_v56, %v1402_v43  ;;  %v3217_v7 = vpop.f32.mrf.mxu0 }
 0x224   :  { %v4249_v28 = vadd.f32 %v3217_v7, %v1484_v32  ;;  %v4251_v44 = vpop.f32.mrf.mxu1 }
 0x225   :  { %v1625_v11 = vpop.f32.mrf.mxu0 }
 0x226   :  { %v4253_v22 = vadd.f32 %v1625_v11, %v1476_v1  ;;  %v4255_v16 = vpop.f32.mrf.mxu1 }
 0x227   :  { %v3218_v18 = vpop.f32.mrf.mxu0 }
 0x228   :  { %v4257_v26 = vadd.f32 %v3218_v18, %v1487_v50  ;;  %v4259_v41 = vpop.f32.mrf.mxu1 }
 0x229   :  { %v1628_v63 = vpop.f32.mrf.mxu0 }
 0x22a   :  { %v4261_v55 = vadd.f32 %v1628_v63, %v1479_v46  ;;  %v4263_v59 = vpop.f32.mrf.mxu1 }
 0x22b   :  { %v3221_v19 = vpop.f32.mrf.mxu0 }
 0x22c   :  { %v4265_v25 = vadd.f32 %v3221_v19, %v1500_v61  ;;  %v4267_v17 = vpop.f32.mrf.mxu1 }
 0x22d   :  { %v1641_v5 = vpop.f32.mrf.mxu0 }
 0x22e   :  { %v4269_v52 = vadd.f32 %v1641_v5, %v1492_v58  ;;  %v4271_v29 = vpop.f32.mrf.mxu1 }
 0x22f   :  { %v3222_v32 = vpop.f32.mrf.mxu0 }
 0x230   :  { %v4273_v6 = vadd.f32 %v3222_v32, %v1503_v40  ;;  %v4275_v37 = vpop.f32.mrf.mxu1 }
 0x231   :  { %v1644_v1 = vpop.f32.mrf.mxu0 }
 0x232   :  { %v4277_v47 = vadd.f32 %v1644_v1, %v1495_v13  ;;  %v4279_v23 = vpop.f32.mrf.mxu1 }
 0x233   :  { %v3225_v50 = vpop.f32.mrf.mxu0 }
 0x234   :  { %v4281_v48 = vadd.f32 %v3225_v50, %v1516_v51  ;;  %v4283_v3 = vpop.f32.mrf.mxu1 }
 0x235   :  { %v1657_v46 = vpop.f32.mrf.mxu0 }
 0x236   :  { %v4285_v54 = vadd.f32 %v1657_v46, %v1508_v34  ;;  %v4287_v9 = vpop.f32.mrf.mxu1 }
 0x237   :  { %v3226_v61 = vpop.f32.mrf.mxu0 }
 0x238   :  { %v4289_v27 = vadd.f32 %v3226_v61, %v1519_v60  ;;  %v4291_v38 = vpop.f32.mrf.mxu1 }
 0x239   :  { %v1660_v58 = vpop.f32.mrf.mxu0 }
 0x23a   :  { %v4293_v39 = vadd.f32 %v1660_v58, %v1511_v49  ;;  %v4295_v10 = vpop.f32.mrf.mxu1 }
 0x23b   :  { %v3229_v40 = vpop.f32.mrf.mxu0 }
 0x23c   :  { %v4297_v30 = vadd.f32 %v3229_v40, %v1532_v45  ;;  %v4299_v20 = vpop.f32.mrf.mxu1 }
 0x23d   :  { %4559 = vst [vmem:[#allocation4_spill] sm:$0xff] %v4299_v20  ;;  %v1673_v13 = vpop.f32.mrf.mxu0  ;;  %v1854_v20 = vadd.f32 %v4255_v16, %v4253_v22  ;;  %v1860_v22 = vadd.f32 %v4267_v17, %v4265_v25 }
 0x23e   :  { %4558 = vst [vmem:[#allocation3_spill] sm:$0xff] %v4297_v30  ;;  %v4301_v53 = vadd.f32 %v1673_v13, %v1524_v42  ;;  %v4303_v62 = vpop.f32.mrf.mxu1 }
 0x23f   :  { %4561 = vst [vmem:[#allocation6_spill] sm:$0xff] %v4303_v62  ;;  %v3230_v51 = vpop.f32.mrf.mxu0 }
 0x240   :  { %4560 = vst [vmem:[#allocation5_spill] sm:$0xff] %v4301_v53  ;;  %v4305_v15 = vadd.f32 %v3230_v51, %v1535_v4  ;;  %v4307_v31 = vpop.f32.mrf.mxu1 }
 0x241   :  { %4563 = vst [vmem:[#allocation8_spill] sm:$0xff] %v4307_v31  ;;  %v1676_v34 = vpop.f32.mrf.mxu0 }
 0x242   :  { %4562 = vst [vmem:[#allocation7_spill] sm:$0xff] %v4305_v15  ;;  %v4309_v33 = vadd.f32 %v1676_v34, %v1527_v12  ;;  %v4311_v0 = vpop.f32.mrf.mxu1 }
 0x243   :  { %4565 = vst [vmem:[#allocation10_spill] sm:$0xff] %v4311_v0  ;;  %v3253_v60 = vpop.f32.mrf.mxu0 }
 0x244   :  { %4564 = vst [vmem:[#allocation9_spill] sm:$0xff] %v4309_v33  ;;  %v3271_v24 = vpop.f32.mrf.mxu1 }
 0x245   :  { %v1957_v57 = vpop.f32.mrf.mxu0 }
 0x246   :  { %v2123_v49 = vpop.f32.mrf.mxu1 }
 0x247   :  { %v3254_v36 = vpop.f32.mrf.mxu0 }
 0x248   :  { %v4313_v8 = vpop.f32.mrf.mxu1 }
 0x249   :  { %v1960_v45 = vpop.f32.mrf.mxu0 }
 0x24a   :  { %v4315_v35 = vpop.f32.mrf.mxu1 }
 0x24b   :  { %v3257_v2 = vpop.f32.mrf.mxu0 }
 0x24c   :  { %v4317_v42 = vpop.f32.mrf.mxu1 }
 0x24d   :  { %v4319_v21 = vpop.f32.mrf.mxu0 }
 0x24e   :  { %v4321_v14 = vpop.f32.mrf.mxu1 }
 0x24f   :  { %v4323_v4 = vpop.f32.mrf.mxu0 }
 0x250   :  { %v4325_v43 = vpop.f32.mrf.mxu1 }
 0x251   :  { %v4327_v56 = vpop.f32.mrf.mxu0 }
 0x252   :  { %v4329_v12 = vpop.f32.mrf.mxu1 }
 0x253   :  { %v4331_v7 = vpop.f32.mrf.mxu0 }
 0x254   :  { %v4333_v11 = vpop.f32.mrf.mxu1 }
 0x255   :  { %4566 = vst [vmem:[#allocation11_spill] sm:$0xff] %v4333_v11  ;;  %v4335_v18 = vpop.f32.mrf.mxu0  ;;  %v2020_v11 = vadd.f32 %v1957_v57, %v1854_v20 }
 0x256   :  { %v4337_v63 = vpop.f32.mrf.mxu1 }
 0x257   :  { %4567 = vst [vmem:[#allocation12_spill] sm:$0xff] %v4337_v63  ;;  %v4339_v19 = vpop.f32.mrf.mxu0  ;;  %v2186_v16 = vadd.f32 %v2123_v49, %v2020_v11 }
 0x258   :  { %4568 = vst [vmem:[#allocation13_spill] sm:$0xff] %v4339_v19  ;;  %v4341_v5 = vpop.f32.mrf.mxu1 }
 0x259   :  { %4569 = vst [vmem:[#allocation14_spill] sm:$0xff] %v4341_v5  ;;  %v4343_v32 = vpop.f32.mrf.mxu0 }
 0x25a   :  { %4570 = vst [vmem:[#allocation15_spill] sm:$0xff] %v4343_v32  ;;  %v4345_v1 = vpop.f32.mrf.mxu1 }
 0x25b   :  { %4571 = vst [vmem:[#allocation16_spill] sm:$0xff] %v4345_v1  ;;  %v4347_v50 = vpop.f32.mrf.mxu0 }
 0x25c   :  { %4572 = vst [vmem:[#allocation17_spill] sm:$0xff] %v4347_v50  ;;  %v4349_v46 = vpop.f32.mrf.mxu1 }
 0x25d   :  { %4573 = vst [vmem:[#allocation18_spill] sm:$0xff] %v4349_v46  ;;  %v4351_v61 = vpop.f32.mrf.mxu0 }
 0x25e   :  { %4574 = vst [vmem:[#allocation19_spill] sm:$0xff] %v4351_v61  ;;  %v4353_v58 = vpop.f32.mrf.mxu1 }
 0x25f   :  { %4575 = vst [vmem:[#allocation20_spill] sm:$0xff] %v4353_v58  ;;  %v4355_v40 = vpop.f32.mrf.mxu0 }
 0x260   :  { %4576 = vst [vmem:[#allocation21_spill] sm:$0xff] %v4355_v40  ;;  %v4357_v13 = vpop.f32.mrf.mxu1 }
 0x261   :  { %4577 = vst [vmem:[#allocation22_spill] sm:$0xff] %v4357_v13  ;;  %v4359_v51 = vpop.f32.mrf.mxu0 }
 0x262   :  { %4578 = vst [vmem:[#allocation23_spill] sm:$0xff] %v4359_v51  ;;  %v4361_v34 = vpop.f32.mrf.mxu1 }
 0x263   :  { %4579 = vst [vmem:[#allocation24_spill] sm:$0xff] %v4361_v34  ;;  %v3289_v0 = vpop.f32.mrf.mxu0  ;;  %v1856_v34 = vadd.f32 %v4251_v44, %v4249_v28  ;;  %v1855_v28 = vadd.f32 %v4263_v59, %v4261_v55  ;;  %v2026_v55 = vadd.f32 %v3257_v2, %v1860_v22 }
 0x264   :  { %v3307_v33 = vpop.f32.mrf.mxu1 }
 0x265   :  { %v2290_v31 = vpop.f32.mrf.mxu0  ;;  %v2022_v30 = vadd.f32 %v3253_v60, %v1856_v34  ;;  %v2021_v60 = vadd.f32 %v1960_v45, %v1855_v28  ;;  %v4586_v28 = vld [vmem:[#allocation13_spill] sm:$0xff] }
 0x266   :  { %v2456_v1 = vpop.f32.mrf.mxu1  ;;  %v2353_v59 = vadd.f32 %v2290_v31, %v2186_v16 }
 0x267   :  { %v3290_v15 = vpop.f32.mrf.mxu0  ;;  %v2188_v44 = vadd.f32 %v3271_v24, %v2022_v30  ;;  %v1861_v30 = vadd.f32 %v4275_v37, %v4273_v6  ;;  %v2187_v17 = vadd.f32 %v4315_v35, %v2021_v60  ;;  %v4416_v6 = vld [vmem:[%s4554_s4] ss:$0 sm:$0xff]  ;;  %v2192_v37 = vadd.f32 %v4317_v42, %v2026_v55  ;;  %v4591_v55 = vld [vmem:[#allocation12_spill] sm:$0xff] }
 0x268   :  { %v3308_v5 = vpop.f32.mrf.mxu1  ;;  %v2519_v31 = vadd.f32 %v2456_v1, %v2353_v59 }
 0x269   :  { %v2293_v50 = vpop.f32.mrf.mxu0  ;;  %v2355_v34 = vadd.f32 %v3289_v0, %v2188_v44 }
 0x26a   :  { %v2459_v61 = vpop.f32.mrf.mxu1  ;;  %v2354_v45 = vadd.f32 %v2293_v50, %v2187_v17 }
 0x26b   :  { %v3293_v46 = vpop.f32.mrf.mxu0  ;;  %v2521_v0 = vadd.f32 %v3307_v33, %v2355_v34 }
 0x26c   :  { %v4367_v40 = vpop.f32.mrf.mxu1 }
 0x26d   :  { %v2306_v62 = vpop.f32.mrf.mxu0 }
 0x26e   :  { %v4375_v32 = vpop.f32.mrf.mxu1 }
 0x26f   :  { %v4363_v53 = vpop.f32.mrf.mxu0  ;;  %4583 = vst [vmem:[#allocation28_spill] sm:$0xff] %v4375_v32 }
 0x271   :  { %v4365_v58 = vpop.f32.mrf.mxu0 }
 0x272   :  { %4580 = vst [vmem:[#allocation25_spill] sm:$0xff] %v4365_v58  ;;  %v1857_v58 = vadd.f32 %v4259_v41, %v4257_v26  ;;  %v1858_v26 = vadd.f32 %v4271_v29, %v4269_v52  ;;  %v1859_v52 = vadd.f32 %v4279_v23, %v4277_v47  ;;  %v2027_v29 = vadd.f32 %v4323_v4, %v1861_v30  ;;  %v4592_v30 = vld [vmem:[#allocation15_spill] sm:$0xff] }
 0x273   :  { %v4369_v13 = vpop.f32.mrf.mxu0 }
 0x274   :  { %4581 = vst [vmem:[#allocation26_spill] sm:$0xff] %v4369_v13  ;;  %v4385_v13 = vpop.f32.mrf.mxu1  ;;  %v2023_v32 = vadd.f32 %v3254_v36, %v1857_v58  ;;  %v2024_v24 = vadd.f32 %v4319_v21, %v1858_v26  ;;  %v2025_v23 = vadd.f32 %v4327_v56, %v1859_v52  ;;  %v2359_v21 = vadd.f32 %v3293_v46, %v2192_v37  ;;  %v4594_v37 = vld [vmem:[#allocation5_spill] sm:$0xff] }
 0x275   :  { %v4371_v51 = vpop.f32.mrf.mxu0  ;;  %v2193_v42 = vadd.f32 %v4325_v43, %v2027_v29 }
 0x276   :  { %4582 = vst [vmem:[#allocation27_spill] sm:$0xff] %v4371_v51  ;;  %v4397_v41 = vpop.f32.mrf.mxu1  ;;  %v2189_v57 = vadd.f32 %v4313_v8, %v2023_v32  ;;  %v2190_v47 = vadd.f32 %v4321_v14, %v2024_v24  ;;  %v1862_v32 = vadd.f32 %v4287_v9, %v4285_v54  ;;  %v2191_v54 = vadd.f32 %v4329_v12, %v2025_v23 }
 0x277   :  { %v4377_v63 = vpop.f32.mrf.mxu0 }
 0x278   :  { %4584 = vst [vmem:[#allocation29_spill] sm:$0xff] %v4377_v63  ;;  %v2356_v49 = vadd.f32 %v3290_v15, %v2189_v57  ;;  %v4411_v36 = vpop.f32.mrf.mxu1  ;;  %v1864_v15 = vadd.f32 %v4283_v3, %v4281_v48  ;;  %v2520_v48 = vadd.f32 %v2459_v61, %v2354_v45  ;;  %v2357_v3 = vadd.f32 %v2306_v62, %v2190_v47  ;;  %v4589_v57 = vld [vmem:[#allocation3_spill] sm:$0xff]  ;;  %v4597_v47 = vld [vmem:[#allocation17_spill] sm:$0xff] }
 0x279   :  { %v4381_v19 = vpop.f32.mrf.mxu0  ;;  %v2028_v9 = vadd.f32 %v4335_v18, %v1862_v32  ;;  %v2360_v62 = vadd.f32 %v4363_v53, %v2193_v42  ;;  %v4588_v53 = vld [vmem:[#allocation25_spill] sm:$0xff]  ;;  %v4599_v42 = vld [vmem:[#allocation7_spill] sm:$0xff] }
 0x27a   :  { %v2522_v2 = vadd.f32 %v3308_v5, %v2356_v49  ;;  %v2030_v1 = vadd.f32 %v4331_v7, %v1864_v15  ;;  %v2488_v50 = vpop.f32.mrf.mxu1  ;;  %v1865_v5 = vadd.f32 %v4291_v38, %v4289_v27  ;;  %v2525_v7 = vadd.f32 %v4367_v40, %v2359_v21  ;;  %v4585_v38 = vld [vmem:[#allocation11_spill] sm:$0xff]  ;;  %v4587_v40 = vld [vmem:[#allocation28_spill] sm:$0xff] }
 0x27b   :  { %v4387_v51 = vpop.f32.mrf.mxu0  ;;  %v1863_v27 = vadd.f32 %v4295_v10, %v4293_v39  ;;  %v2523_v16 = vadd.f32 %v4587_v40, %v2357_v3  ;;  %v2358_v60 = vadd.f32 %v4588_v53, %v2191_v54  ;;  %v4590_v39 = vld [vmem:[#allocation4_spill] sm:$0xff]  ;;  %v2194_v59 = vadd.f32 %v4591_v55, %v2028_v9  ;;  %v4593_v49 = vld [vmem:[#allocation26_spill] sm:$0xff] }
 0x27c   :  { %v2196_v12 = vadd.f32 %v4585_v38, %v2030_v1  ;;  %v2031_v18 = vadd.f32 %v4586_v28, %v1865_v5  ;;  %v3316_v44 = vpop.f32.mrf.mxu1  ;;  %v1868_v10 = vadd.f32 %v4590_v39, %v4589_v57  ;;  %v4600_v1 = vld [vmem:[#allocation8_spill] sm:$0xff] }
 0x27d   :  { %v4391_v63 = vpop.f32.mrf.mxu0  ;;  %v2029_v24 = vadd.f32 %v4592_v30, %v1863_v27  ;;  %v4598_v21 = vld [vmem:[#allocation27_spill] sm:$0xff]  ;;  %v4606_v27 = vld [vmem:[#allocation18_spill] sm:$0xff] }
 0x27e   :  { %v2363_v52 = vadd.f32 %v4593_v49, %v2196_v12  ;;  %v2034_v23 = vadd.f32 %v4597_v47, %v1868_v10  ;;  %v4607_v12 = vld [vmem:[#allocation21_spill] sm:$0xff] }
 0x27f   :  { %v4399_v20 = vpop.f32.mrf.mxu0  ;;  %v4603_v54 = vld [vmem:[#allocation29_spill] sm:$0xff] }
 0x280   :  { %v2200_v38 = vadd.f32 %v4606_v27, %v2034_v23 }
 0x281   :  { %v4405_v25 = vpop.f32.mrf.mxu0 }
 0x282   :  { %v2367_v55 = vadd.f32 %v4387_v51, %v2200_v38 }
 0x283   :  { %v3325_v8 = vpop.f32.mrf.mxu0 }
 0x284   :  { %v2687_v35 = vadd.f32 %v3325_v8, %v2521_v0  ;;  %v2526_v0 = vadd.f32 %v4385_v13, %v2360_v62  ;;  %v2524_v13 = vadd.f32 %v4397_v41, %v2358_v60  ;;  %v2529_v41 = vadd.f32 %v4411_v36, %v2363_v52  ;;  %v4604_v62 = vld [vmem:[#allocation9_spill] sm:$0xff]  ;;  %v4608_v60 = vld [vmem:[#allocation20_spill] sm:$0xff] }
 0x285   :  { %v2622_v33 = vpop.f32.mrf.mxu0  ;;  %v4611_v52 = vld [vmem:[#allocation24_spill] sm:$0xff] }
 0x286   :  { %v2710_v4 = vadd.f32 %v4416_v6, %v2687_v35  ;;  %v2685_v11 = vadd.f32 %v2622_v33, %v2519_v31  ;;  %v4595_v31 = vld [vmem:[#allocation6_spill] sm:$0xff]  ;;  %v2491_v33 = vpop.f32.mrf.mxu1 }
 0x287   :  { %v3326_v58 = vpop.f32.mrf.mxu0  ;;  %v1866_v45 = vadd.f32 %v4595_v31, %v4594_v37  ;;  %v4596_v35 = vld [vmem:[#allocation14_spill] sm:$0xff] }
 0x288   :  { %2726 = vst.msk [vmem:[%s4555_s5 + $0x10] sm:$0xff] %vm577_vm10, %v2710_v4  ;;  %v2708_v14 = vadd.f32 %v4416_v6, %v2685_v11  ;;  %v2688_v56 = vadd.f32 %v3326_v58, %v2522_v2  ;;  %v2197_v15 = vadd.f32 %v4596_v35, %v2031_v18  ;;  %v2361_v4 = vadd.f32 %v4598_v21, %v2194_v59  ;;  %v3319_v18 = vpop.f32.mrf.mxu1  ;;  %v4610_v59 = vld [vmem:[#allocation22_spill] sm:$0xff] }
 0x289   :  { %v2625_v43 = vpop.f32.mrf.mxu0  ;;  %v1869_v58 = vadd.f32 %v4600_v1, %v4599_v42  ;;  %v2533_v37 = vadd.f32 %v3319_v18, %v2367_v55 }
 0x28a   :  { %2724 = vst.msk [vmem:[%s4555_s5] sm:$0xff] %vm577_vm10, %v2708_v14  ;;  %v2711_v46 = vadd.f32 %v4416_v6, %v2688_v56  ;;  %v2686_v61 = vadd.f32 %v2625_v43, %v2520_v48  ;;  %v4601_v48 = vld [vmem:[#allocation16_spill] sm:$0xff]  ;;  %v4602_v14 = vld [vmem:[#allocation19_spill] sm:$0xff]  ;;  %v2364_v9 = vadd.f32 %v4603_v54, %v2197_v15  ;;  %v2527_v36 = vadd.f32 %v2488_v50, %v2361_v4 }
 0x28b   :  { %v3329_v22 = vpop.f32.mrf.mxu0  ;;  %v2195_v3 = vadd.f32 %v4601_v48, %v2029_v24  ;;  %v2032_v56 = vadd.f32 %v4602_v14, %v1866_v45  ;;  %v2035_v28 = vadd.f32 %v4607_v12, %v1869_v58  ;;  %v2504_v24 = vpop.f32.mrf.mxu1 }
 0x28c   :  { %2727 = vst.msk [vmem:[%s4555_s5 + $0x18] sm:$0xff] %vm577_vm10, %v2711_v46  ;;  %v2709_v34 = vadd.f32 %v4416_v6, %v2686_v61  ;;  %v2691_v26 = vadd.f32 %v3329_v22, %v2525_v7  ;;  %v4605_v46 = vld [vmem:[#allocation10_spill] sm:$0xff]  ;;  %v2530_v10 = vadd.f32 %v3316_v44, %v2364_v9 }
 0x28d   :  { %v2638_v17 = vpop.f32.mrf.mxu0  ;;  %v1867_v61 = vadd.f32 %v4605_v46, %v4604_v62  ;;  %v2362_v40 = vadd.f32 %v4381_v19, %v2195_v3  ;;  %v2201_v30 = vadd.f32 %v4610_v59, %v2035_v28  ;;  %v3320_v35 = vpop.f32.mrf.mxu1 }
 0x28e   :  { %2725 = vst.msk [vmem:[%s4555_s5 + $0x8] sm:$0xff] %vm577_vm10, %v2709_v34  ;;  %v2714_v29 = vadd.f32 %v4416_v6, %v2691_v26  ;;  %v2689_v8 = vadd.f32 %v2638_v17, %v2523_v16  ;;  %v2198_v34 = vadd.f32 %v4608_v60, %v2032_v56  ;;  %v4609_v26 = vld [vmem:[#allocation23_spill] sm:$0xff] }
 0x28f   :  { %v3330_v2 = vpop.f32.mrf.mxu0  ;;  %v2033_v57 = vadd.f32 %v4609_v26, %v1867_v61  ;;  %v2368_v31 = vadd.f32 %v4399_v20, %v2201_v30 }
 0x290   :  { %2730 = vst.msk [vmem:[%s4555_s5 + $0x30] sm:$0xff] %vm577_vm10, %v2714_v29  ;;  %v2712_v11 = vadd.f32 %v4416_v6, %v2689_v8  ;;  %v2692_v32 = vadd.f32 %v3330_v2, %v2526_v0  ;;  %v2528_v0 = vadd.f32 %v2491_v33, %v2362_v40  ;;  %v2365_v49 = vadd.f32 %v4391_v63, %v2198_v34 }
 0x291   :  { %v2641_v5 = vpop.f32.mrf.mxu0  ;;  %v2199_v29 = vadd.f32 %v4611_v52, %v2033_v57 }
 0x292   :  { %2728 = vst.msk [vmem:[%s4555_s5 + $0x20] sm:$0xff] %vm577_vm10, %v2712_v11  ;;  %v2715_v43 = vadd.f32 %v4416_v6, %v2692_v32  ;;  %v2690_v7 = vadd.f32 %v2641_v5, %v2524_v13  ;;  %v2531_v47 = vadd.f32 %v2504_v24, %v2365_v49  ;;  %v2534_v13 = vadd.f32 %v3320_v35, %v2368_v31  ;;  %v2507_v11 = vpop.f32.mrf.mxu1 }
 0x293   :  { %v3333_v22 = vpop.f32.mrf.mxu0  ;;  %v2366_v23 = vadd.f32 %v4405_v25, %v2199_v29 }
 0x294   :  { %2731 = vst.msk [vmem:[%s4555_s5 + $0x38] sm:$0xff] %vm577_vm10, %v2715_v43  ;;  %v2713_v16 = vadd.f32 %v4416_v6, %v2690_v7  ;;  %v2695_v53 = vadd.f32 %v3333_v22, %v2529_v41 }
 0x295   :  { %v2654_v39 = vpop.f32.mrf.mxu0  ;;  %v2532_v32 = vadd.f32 %v2507_v11, %v2366_v23 }
 0x296   :  { %2729 = vst.msk [vmem:[%s4555_s5 + $0x28] sm:$0xff] %vm577_vm10, %v2713_v16  ;;  %v2718_v19 = vadd.f32 %v4416_v6, %v2695_v53  ;;  %v2693_v50 = vadd.f32 %v2654_v39, %v2527_v36 }
 0x297   :  { %v3334_v17 = vpop.f32.mrf.mxu0 }
 0x298   :  { %2734 = vst.msk [vmem:[%s4555_s5 + $0x50] sm:$0xff] %vm577_vm10, %v2718_v19  ;;  %v2716_v51 = vadd.f32 %v4416_v6, %v2693_v50  ;;  %v2696_v44 = vadd.f32 %v3334_v17, %v2530_v10 }
 0x299   :  { %v2657_v8 = vpop.f32.mrf.mxu0 }
 0x29a   :  { %2732 = vst.msk [vmem:[%s4555_s5 + $0x40] sm:$0xff] %vm577_vm10, %v2716_v51  ;;  %v2719_v63 = vadd.f32 %v4416_v6, %v2696_v44  ;;  %v2694_v45 = vadd.f32 %v2657_v8, %v2528_v0 }
 0x29b   :  { %v3337_v15 = vpop.f32.mrf.mxu0 }
 0x29c   :  { %2735 = vst.msk [vmem:[%s4555_s5 + $0x58] sm:$0xff] %vm577_vm10, %v2719_v63  ;;  %v2717_v20 = vadd.f32 %v4416_v6, %v2694_v45  ;;  %v2699_v33 = vadd.f32 %v3337_v15, %v2533_v37 }
 0x29d   :  { %v2670_v2 = vpop.f32.mrf.mxu0 }
 0x29e   :  { %2733 = vst.msk [vmem:[%s4555_s5 + $0x48] sm:$0xff] %vm577_vm10, %v2717_v20  ;;  %v2722_v21 = vadd.f32 %v4416_v6, %v2699_v33  ;;  %v2697_v4 = vadd.f32 %v2670_v2, %v2531_v47 }
 0x29f   :  { %v3338_v25 = vpop.f32.mrf.mxu0 }
 0x2a0   :  { %2738 = vst.msk [vmem:[%s4555_s5 + $0x70] sm:$0xff] %vm577_vm10, %v2722_v21  ;;  %v2720_v42 = vadd.f32 %v4416_v6, %v2697_v4  ;;  %v2700_v1 = vadd.f32 %v3338_v25, %v2534_v13 }
 0x2a1   :  { %v2673_v58 = vpop.f32.mrf.mxu0 }
 0x2a2   :  { %2736 = vst.msk [vmem:[%s4555_s5 + $0x60] sm:$0xff] %vm577_vm10, %v2720_v42  ;;  %v2723_v48 = vadd.f32 %v4416_v6, %v2700_v1  ;;  %v2698_v3 = vadd.f32 %v2673_v58, %v2532_v32 }
 0x2a4   :  { %2739 = vst.msk [vmem:[%s4555_s5 + $0x78] sm:$0xff] %vm577_vm10, %v2723_v48  ;;  %v2721_v14 = vadd.f32 %v4416_v6, %v2698_v3 }
 0x2a6   :  { %2737 = vst.msk [vmem:[%s4555_s5 + $0x68] sm:$0xff] %vm577_vm10, %v2721_v14 }

</bundles_post_ra>
